<compile_context>
chip_gen: v6e
topology: v6e:2x2x1
jax: 0.10.0
libtpu: 0.0.40
codegen_flags: <defaults>
</compile_context>

<pallas_src>
import jax
import jax.numpy as jnp
import numpy as np
from jax.experimental import pallas as pl
from jax.experimental.pallas import tpu as pltpu

HIDDEN = 2
INPUT = 5
NUM_CLASSES = 1
FC1 = 128


def gru1_kernel(x_ref, wih_ref, whh_ref, bic_ref, bhn_ref,
                w1_ref, b1_ref, w2_ref, b2_ref, out_ref):
    # Per batch-tile shapes (TB = batch tile, batch on lanes):
    #   x_ref   : (S, I, TB)  time-major input, features on sublanes, batch on lanes
    #   wih_ref : (3H, I)     rows = gate units (r, z, n), cols = input features
    #   whh_ref : (3H, H)     rows = gate units, cols = hidden features
    #   bic_ref : (3H, 1)     combined biases [bir+bhr ; biz+bhz ; bin]
    #   bhn_ref : (H, 1)      bhn (separate: it is gated by r inside tanh)
    #   w1_ref  : (128, H), b1_ref : (128, 1)
    #   w2_ref  : (128, 1),  b2_ref : (1, 1)
    #   out_ref : (1, TB)     lane-dense output row
    S, I, TB = x_ref.shape
    H = whh_ref.shape[1]

    x = x_ref[...]
    wih = wih_ref[...]
    whh = whh_ref[...]
    bic = bic_ref[...]
    bhn = bhn_ref[...]

    # Weight columns sliced once (outside all time loops).
    wih_cols = [wih[:, i:i + 1] for i in range(I)]        # each (3H, 1)
    whh_cols = [whh[:, j:j + 1] for j in range(H)]        # each (3H, 1)

    # ---- Input-side gate projections, hoisted off the serial chain -------------
    # xg[t][g, b] = sum_i Wih[g, i] * x[t, i, b] + combined_bias[g]
    xg = []
    for t in range(S):
        x_t = x[t]                                        # (I, TB) static slice
        acc = wih_cols[0] * x_t[0:1, :] + bic             # (3H, TB)
        for i in range(1, I):
            acc = acc + wih_cols[i] * x_t[i:i + 1, :]
        xg.append(acc)

    # ---- Recurrence (fully unrolled; S is static) -------------------------------
    # All gate math is (3H, TB) / (H, TB): one vreg per op for TB <= 128.
    h = jnp.zeros((H, TB), jnp.float32)
    for t in range(S):
        hg = whh_cols[0] * h[0:1, :]                      # h @ Whh^T on the VPU
        for j in range(1, H):
            hg = hg + whh_cols[j] * h[j:j + 1, :]         # (3H, TB)
        ig = xg[t]
        r = jax.nn.sigmoid(ig[0:H, :] + hg[0:H, :])
        z = jax.nn.sigmoid(ig[H:2 * H, :] + hg[H:2 * H, :])
        n = jnp.tanh(ig[2 * H:, :] + r * (hg[2 * H:, :] + bhn))
        h = n + z * (h - n)                               # == (1-z)*n + z*h

    # ---- Head: ReLU -> Linear(H, 128) -> ReLU -> Linear(128, 1) ----------------
    hr = jnp.maximum(h, 0.0)                              # (H, TB)
    w1 = w1_ref[...]                                      # (128, H)
    f1 = w1[:, 0:1] * hr[0:1, :]                          # VPU MACs (K=2 matmul)
    for j in range(1, H):
        f1 = f1 + w1[:, j:j + 1] * hr[j:j + 1, :]         # (128, TB)
    f1 = jnp.maximum(f1 + b1_ref[...], 0.0)
    # Linear(128, 1): an N=1 MXU dot wastes 127/128 of the array -> VPU mul + reduce.
    out = jnp.sum(f1 * w2_ref[...], axis=0, keepdims=True) + b2_ref[...]
    out_ref[...] = out.astype(out_ref.dtype)              # (1, TB) lane-dense store


def gru1_forward(x, kernel_params, *, batch_tile=None):
    """x: (B, S, I) float32 (batch_first, like the PyTorch module)."""
    wihT, whhT, bicT, bhnT, w1T, b1T, w2c, b2 = kernel_params
    B, S, I = x.shape
    tb = B if batch_tile is None else batch_tile
    assert B % tb == 0, "batch must be divisible by batch_tile"
    grid = (B // tb,)

    # Layout plumbing in the wrapper (not compute): time-major, batch on lanes.
    xT = jnp.transpose(x, (1, 2, 0))                      # (S, I, B)

    const2 = lambda b: (0, 0)   # weights/biases: same block every step -> resident in VMEM
    out = pl.pallas_call(
        gru1_kernel,
        out_shape=jax.ShapeDtypeStruct((NUM_CLASSES, B), jnp.float32),
        grid_spec=pltpu.PrefetchScalarGridSpec(
            num_scalar_prefetch=0,
            grid=grid,
            in_specs=[
                pl.BlockSpec((S, I, tb), lambda b: (0, 0, b)),   # batch tile of x
                pl.BlockSpec(wihT.shape, const2),
                pl.BlockSpec(whhT.shape, const2),
                pl.BlockSpec(bicT.shape, const2),
                pl.BlockSpec(bhnT.shape, const2),
                pl.BlockSpec(w1T.shape, const2),
                pl.BlockSpec(b1T.shape, const2),
                pl.BlockSpec(w2c.shape, const2),
                pl.BlockSpec(b2.shape, const2),
            ],
            out_specs=pl.BlockSpec((NUM_CLASSES, tb), lambda b: (0, b)),
        ),
        compiler_params=pltpu.CompilerParams(
            dimension_semantics=("parallel",),   # batch tiles are independent (megacore)
        ),
    )(xT, wihT, whhT, bicT, bhnT, w1T, b1T, w2c, b2)
    return out.T                                          # (B, num_classes)


def init_params(key):
    """Deterministic init mirroring PyTorch default U(-1/sqrt(fan), 1/sqrt(fan))."""
    ks = jax.random.split(key, 10)
    kg = 1.0 / np.sqrt(HIDDEN)
    k1 = 1.0 / np.sqrt(HIDDEN)   # fc_1 fan_in = hidden
    k2 = 1.0 / np.sqrt(FC1)      # fc   fan_in = 128

    def u(k, shape, bound):
        return jax.random.uniform(k, shape, minval=-bound, maxval=bound, dtype=jnp.float32)

    return {
        # GRU weights in math orientation (in, out), stacked per gate (r, z, n)
        "wih": u(ks[0], (3, INPUT, HIDDEN), kg),
        "whh": u(ks[1], (3, HIDDEN, HIDDEN), kg),
        "bih": u(ks[2], (3, 1, HIDDEN), kg),
        "bhh": u(ks[3], (3, 1, HIDDEN), kg),
        # fc_1: Linear(hidden, 128)
        "w1": u(ks[4], (HIDDEN, FC1), k1),
        "b1": u(ks[5], (1, FC1), k1),
        # fc: Linear(128, num_classes)
        "w2": u(ks[6], (FC1, NUM_CLASSES), k2),
        "b2": u(ks[7], (1, NUM_CLASSES), k2),
    }


def pack_params(p):
    """Repack per-gate params into the gate-on-sublane layout the kernel consumes."""
    wihT = jnp.concatenate([p["wih"][0].T, p["wih"][1].T, p["wih"][2].T], axis=0)  # (3H, I)
    whhT = jnp.concatenate([p["whh"][0].T, p["whh"][1].T, p["whh"][2].T], axis=0)  # (3H, H)
    # Combined biases for r and z (bih+bhh); n keeps only bin here, bhn stays separate.
    bicT = jnp.concatenate([(p["bih"][0] + p["bhh"][0]).T,
                            (p["bih"][1] + p["bhh"][1]).T,
                            p["bih"][2].T], axis=0)                                # (3H, 1)
    bhnT = p["bhh"][2].T                                                           # (H, 1)
    return (wihT, whhT, bicT, bhnT,
            p["w1"].T,          # (128, H)
            p["b1"].T,          # (128, 1)
            p["w2"],            # (128, 1)
            p["b2"])            # (1, 1)


def gru1_reference(x, p):
    """Pure-JAX reference of the same forward pass (for validation)."""
    B, S, _ = x.shape
    h = jnp.zeros((B, HIDDEN), jnp.float32)
    for t in range(S):
        x_t = x[:, t, :]
        i_r = x_t @ p["wih"][0] + p["bih"][0]
        i_z = x_t @ p["wih"][1] + p["bih"][1]
        i_n = x_t @ p["wih"][2] + p["bih"][2]
        h_r = h @ p["whh"][0] + p["bhh"][0]
        h_z = h @ p["whh"][1] + p["bhh"][1]
        h_n = h @ p["whh"][2] + p["bhh"][2]
        r = jax.nn.sigmoid(i_r + h_r)
        z = jax.nn.sigmoid(i_z + h_z)
        n = jnp.tanh(i_n + r * h_n)
        h = (1.0 - z) * n + z * h
    out = jnp.maximum(h, 0.0)
    out = jnp.maximum(out @ p["w1"] + p["b1"], 0.0)
    return out @ p["w2"] + p["b2"]


if __name__ == "__main__":
    key = jax.random.PRNGKey(0)
    k_x, k_p, k_x2 = jax.random.split(key, 3)

    batch, seq_length = 2, 8
    x = jax.random.normal(k_x, (batch, seq_length, INPUT), dtype=jnp.float32)
    params = init_params(k_p)
    kparams = pack_params(params)

    out = gru1_forward(x, kparams)
    out = jax.block_until_ready(out)
    ref = gru1_reference(x, params)
    np.testing.assert_allclose(np.asarray(out), np.asarray(ref), rtol=1e-5, atol=1e-5)
    assert out.shape == (batch, NUM_CLASSES)

    # Exercise the pipelined batch grid: 2 lane-dense tiles of 128 rows, parallel semantics.
    xb = jax.random.normal(k_x2, (256, seq_length, INPUT), dtype=jnp.float32)
    out_b = jax.block_until_ready(gru1_forward(xb, kparams, batch_tile=128))
    np.testing.assert_allclose(np.asarray(out_b), np.asarray(gru1_reference(xb, params)),
                               rtol=1e-5, atol=1e-5)

    print("KERNEL_OK")
</pallas_src>

<mosaic_0001>
module attributes {stable_mosaic.version = 11 : i64} {
  func.func @gru1_kernel(%arg0: i32, %arg1: memref<8x5x2xf32, #tpu.memory_space<vmem>>, %arg2: memref<6x5xf32, #tpu.memory_space<vmem>>, %arg3: memref<6x2xf32, #tpu.memory_space<vmem>>, %arg4: memref<6x1xf32, #tpu.memory_space<vmem>>, %arg5: memref<2x1xf32, #tpu.memory_space<vmem>>, %arg6: memref<128x2xf32, #tpu.memory_space<vmem>>, %arg7: memref<128x1xf32, #tpu.memory_space<vmem>>, %arg8: memref<128x1xf32, #tpu.memory_space<vmem>>, %arg9: memref<1x1xf32, #tpu.memory_space<vmem>>, %arg10: memref<1x2xf32, #tpu.memory_space<vmem>>) attributes {dimension_semantics = [#tpu.dimension_semantics<parallel>], iteration_bounds = array<i64: 1>, scalar_prefetch = 0 : i64, scratch_operands = 0 : i64, tpu.core_type = #tpu.core_type<tc>, window_params = [{transform_indices = @transform_0, window_bounds = array<i64: 8, 5, 2>}, {pipeline_mode = #tpu.pipeline_mode<synchronous>, transform_indices = @transform_1, window_bounds = array<i64: 6, 5>}, {pipeline_mode = #tpu.pipeline_mode<synchronous>, transform_indices = @transform_2, window_bounds = array<i64: 6, 2>}, {pipeline_mode = #tpu.pipeline_mode<synchronous>, transform_indices = @transform_3, window_bounds = array<i64: 6, 1>}, {pipeline_mode = #tpu.pipeline_mode<synchronous>, transform_indices = @transform_4, window_bounds = array<i64: 2, 1>}, {pipeline_mode = #tpu.pipeline_mode<synchronous>, transform_indices = @transform_5, window_bounds = array<i64: 128, 2>}, {pipeline_mode = #tpu.pipeline_mode<synchronous>, transform_indices = @transform_6, window_bounds = array<i64: 128, 1>}, {pipeline_mode = #tpu.pipeline_mode<synchronous>, transform_indices = @transform_7, window_bounds = array<i64: 128, 1>}, {pipeline_mode = #tpu.pipeline_mode<synchronous>, transform_indices = @transform_8, window_bounds = array<i64: 1, 1>}, {transform_indices = @transform_9, window_bounds = array<i64: 1, 2>}]} {
    %c0 = arith.constant 0 : index
    %c0_0 = arith.constant 0 : index
    %c0_1 = arith.constant 0 : index
    %0 = vector.load %arg1[%c0, %c0_0, %c0_1] : memref<8x5x2xf32, #tpu.memory_space<vmem>>, vector<8x5x2xf32>
    %c0_2 = arith.constant 0 : index
    %c0_3 = arith.constant 0 : index
    %1 = vector.load %arg2[%c0_2, %c0_3] : memref<6x5xf32, #tpu.memory_space<vmem>>, vector<6x5xf32>
    %c0_4 = arith.constant 0 : index
    %c0_5 = arith.constant 0 : index
    %2 = vector.load %arg3[%c0_4, %c0_5] : memref<6x2xf32, #tpu.memory_space<vmem>>, vector<6x2xf32>
    %c0_6 = arith.constant 0 : index
    %c0_7 = arith.constant 0 : index
    %3 = vector.load %arg4[%c0_6, %c0_7] : memref<6x1xf32, #tpu.memory_space<vmem>>, vector<6x1xf32>
    %c0_8 = arith.constant 0 : index
    %c0_9 = arith.constant 0 : index
    %4 = vector.load %arg5[%c0_8, %c0_9] : memref<2x1xf32, #tpu.memory_space<vmem>>, vector<2x1xf32>
    %5 = vector.extract_strided_slice %1 {offsets = [0, 0], sizes = [6, 1], strides = [1, 1]} : vector<6x5xf32> to vector<6x1xf32>
    %6 = vector.extract_strided_slice %1 {offsets = [0, 1], sizes = [6, 1], strides = [1, 1]} : vector<6x5xf32> to vector<6x1xf32>
    %7 = vector.extract_strided_slice %1 {offsets = [0, 2], sizes = [6, 1], strides = [1, 1]} : vector<6x5xf32> to vector<6x1xf32>
    %8 = vector.extract_strided_slice %1 {offsets = [0, 3], sizes = [6, 1], strides = [1, 1]} : vector<6x5xf32> to vector<6x1xf32>
    %9 = vector.extract_strided_slice %1 {offsets = [0, 4], sizes = [6, 1], strides = [1, 1]} : vector<6x5xf32> to vector<6x1xf32>
    %10 = vector.extract_strided_slice %2 {offsets = [0, 0], sizes = [6, 1], strides = [1, 1]} : vector<6x2xf32> to vector<6x1xf32>
    %11 = vector.extract_strided_slice %2 {offsets = [0, 1], sizes = [6, 1], strides = [1, 1]} : vector<6x2xf32> to vector<6x1xf32>
    %12 = vector.extract_strided_slice %0 {offsets = [0, 0, 0], sizes = [1, 5, 2], strides = [1, 1, 1]} : vector<8x5x2xf32> to vector<1x5x2xf32>
    %13 = vector.shape_cast %12 : vector<1x5x2xf32> to vector<5x2xf32>
    %14 = vector.extract_strided_slice %13 {offsets = [0, 0], sizes = [1, 2], strides = [1, 1]} : vector<5x2xf32> to vector<1x2xf32>
    %15 = vector.broadcast %5 : vector<6x1xf32> to vector<6x2xf32>
    %16 = vector.broadcast %14 : vector<1x2xf32> to vector<6x2xf32>
    %17 = arith.mulf %15, %16 : vector<6x2xf32>
    %18 = vector.broadcast %3 : vector<6x1xf32> to vector<6x2xf32>
    %19 = arith.addf %17, %18 : vector<6x2xf32>
    %20 = vector.extract_strided_slice %13 {offsets = [1, 0], sizes = [1, 2], strides = [1, 1]} : vector<5x2xf32> to vector<1x2xf32>
    %21 = vector.broadcast %6 : vector<6x1xf32> to vector<6x2xf32>
    %22 = vector.broadcast %20 : vector<1x2xf32> to vector<6x2xf32>
    %23 = arith.mulf %21, %22 : vector<6x2xf32>
    %24 = arith.addf %19, %23 : vector<6x2xf32>
    %25 = vector.extract_strided_slice %13 {offsets = [2, 0], sizes = [1, 2], strides = [1, 1]} : vector<5x2xf32> to vector<1x2xf32>
    %26 = vector.broadcast %7 : vector<6x1xf32> to vector<6x2xf32>
    %27 = vector.broadcast %25 : vector<1x2xf32> to vector<6x2xf32>
    %28 = arith.mulf %26, %27 : vector<6x2xf32>
    %29 = arith.addf %24, %28 : vector<6x2xf32>
    %30 = vector.extract_strided_slice %13 {offsets = [3, 0], sizes = [1, 2], strides = [1, 1]} : vector<5x2xf32> to vector<1x2xf32>
    %31 = vector.broadcast %8 : vector<6x1xf32> to vector<6x2xf32>
    %32 = vector.broadcast %30 : vector<1x2xf32> to vector<6x2xf32>
    %33 = arith.mulf %31, %32 : vector<6x2xf32>
    %34 = arith.addf %29, %33 : vector<6x2xf32>
    %35 = vector.extract_strided_slice %13 {offsets = [4, 0], sizes = [1, 2], strides = [1, 1]} : vector<5x2xf32> to vector<1x2xf32>
    %36 = vector.broadcast %9 : vector<6x1xf32> to vector<6x2xf32>
    %37 = vector.broadcast %35 : vector<1x2xf32> to vector<6x2xf32>
    %38 = arith.mulf %36, %37 : vector<6x2xf32>
    %39 = arith.addf %34, %38 : vector<6x2xf32>
    %40 = vector.extract_strided_slice %0 {offsets = [1, 0, 0], sizes = [1, 5, 2], strides = [1, 1, 1]} : vector<8x5x2xf32> to vector<1x5x2xf32>
    %41 = vector.shape_cast %40 : vector<1x5x2xf32> to vector<5x2xf32>
    %42 = vector.extract_strided_slice %41 {offsets = [0, 0], sizes = [1, 2], strides = [1, 1]} : vector<5x2xf32> to vector<1x2xf32>
    %43 = vector.broadcast %5 : vector<6x1xf32> to vector<6x2xf32>
    %44 = vector.broadcast %42 : vector<1x2xf32> to vector<6x2xf32>
    %45 = arith.mulf %43, %44 : vector<6x2xf32>
    %46 = vector.broadcast %3 : vector<6x1xf32> to vector<6x2xf32>
    %47 = arith.addf %45, %46 : vector<6x2xf32>
    %48 = vector.extract_strided_slice %41 {offsets = [1, 0], sizes = [1, 2], strides = [1, 1]} : vector<5x2xf32> to vector<1x2xf32>
    %49 = vector.broadcast %6 : vector<6x1xf32> to vector<6x2xf32>
    %50 = vector.broadcast %48 : vector<1x2xf32> to vector<6x2xf32>
    %51 = arith.mulf %49, %50 : vector<6x2xf32>
    %52 = arith.addf %47, %51 : vector<6x2xf32>
    %53 = vector.extract_strided_slice %41 {offsets = [2, 0], sizes = [1, 2], strides = [1, 1]} : vector<5x2xf32> to vector<1x2xf32>
    %54 = vector.broadcast %7 : vector<6x1xf32> to vector<6x2xf32>
    %55 = vector.broadcast %53 : vector<1x2xf32> to vector<6x2xf32>
    %56 = arith.mulf %54, %55 : vector<6x2xf32>
    %57 = arith.addf %52, %56 : vector<6x2xf32>
    %58 = vector.extract_strided_slice %41 {offsets = [3, 0], sizes = [1, 2], strides = [1, 1]} : vector<5x2xf32> to vector<1x2xf32>
    %59 = vector.broadcast %8 : vector<6x1xf32> to vector<6x2xf32>
    %60 = vector.broadcast %58 : vector<1x2xf32> to vector<6x2xf32>
    %61 = arith.mulf %59, %60 : vector<6x2xf32>
    %62 = arith.addf %57, %61 : vector<6x2xf32>
    %63 = vector.extract_strided_slice %41 {offsets = [4, 0], sizes = [1, 2], strides = [1, 1]} : vector<5x2xf32> to vector<1x2xf32>
    %64 = vector.broadcast %9 : vector<6x1xf32> to vector<6x2xf32>
    %65 = vector.broadcast %63 : vector<1x2xf32> to vector<6x2xf32>
    %66 = arith.mulf %64, %65 : vector<6x2xf32>
    %67 = arith.addf %62, %66 : vector<6x2xf32>
    %68 = vector.extract_strided_slice %0 {offsets = [2, 0, 0], sizes = [1, 5, 2], strides = [1, 1, 1]} : vector<8x5x2xf32> to vector<1x5x2xf32>
    %69 = vector.shape_cast %68 : vector<1x5x2xf32> to vector<5x2xf32>
    %70 = vector.extract_strided_slice %69 {offsets = [0, 0], sizes = [1, 2], strides = [1, 1]} : vector<5x2xf32> to vector<1x2xf32>
    %71 = vector.broadcast %5 : vector<6x1xf32> to vector<6x2xf32>
    %72 = vector.broadcast %70 : vector<1x2xf32> to vector<6x2xf32>
    %73 = arith.mulf %71, %72 : vector<6x2xf32>
    %74 = vector.broadcast %3 : vector<6x1xf32> to vector<6x2xf32>
    %75 = arith.addf %73, %74 : vector<6x2xf32>
    %76 = vector.extract_strided_slice %69 {offsets = [1, 0], sizes = [1, 2], strides = [1, 1]} : vector<5x2xf32> to vector<1x2xf32>
    %77 = vector.broadcast %6 : vector<6x1xf32> to vector<6x2xf32>
    %78 = vector.broadcast %76 : vector<1x2xf32> to vector<6x2xf32>
    %79 = arith.mulf %77, %78 : vector<6x2xf32>
    %80 = arith.addf %75, %79 : vector<6x2xf32>
    %81 = vector.extract_strided_slice %69 {offsets = [2, 0], sizes = [1, 2], strides = [1, 1]} : vector<5x2xf32> to vector<1x2xf32>
    %82 = vector.broadcast %7 : vector<6x1xf32> to vector<6x2xf32>
    %83 = vector.broadcast %81 : vector<1x2xf32> to vector<6x2xf32>
    %84 = arith.mulf %82, %83 : vector<6x2xf32>
    %85 = arith.addf %80, %84 : vector<6x2xf32>
    %86 = vector.extract_strided_slice %69 {offsets = [3, 0], sizes = [1, 2], strides = [1, 1]} : vector<5x2xf32> to vector<1x2xf32>
    %87 = vector.broadcast %8 : vector<6x1xf32> to vector<6x2xf32>
    %88 = vector.broadcast %86 : vector<1x2xf32> to vector<6x2xf32>
    %89 = arith.mulf %87, %88 : vector<6x2xf32>
    %90 = arith.addf %85, %89 : vector<6x2xf32>
    %91 = vector.extract_strided_slice %69 {offsets = [4, 0], sizes = [1, 2], strides = [1, 1]} : vector<5x2xf32> to vector<1x2xf32>
    %92 = vector.broadcast %9 : vector<6x1xf32> to vector<6x2xf32>
    %93 = vector.broadcast %91 : vector<1x2xf32> to vector<6x2xf32>
    %94 = arith.mulf %92, %93 : vector<6x2xf32>
    %95 = arith.addf %90, %94 : vector<6x2xf32>
    %96 = vector.extract_strided_slice %0 {offsets = [3, 0, 0], sizes = [1, 5, 2], strides = [1, 1, 1]} : vector<8x5x2xf32> to vector<1x5x2xf32>
    %97 = vector.shape_cast %96 : vector<1x5x2xf32> to vector<5x2xf32>
    %98 = vector.extract_strided_slice %97 {offsets = [0, 0], sizes = [1, 2], strides = [1, 1]} : vector<5x2xf32> to vector<1x2xf32>
    %99 = vector.broadcast %5 : vector<6x1xf32> to vector<6x2xf32>
    %100 = vector.broadcast %98 : vector<1x2xf32> to vector<6x2xf32>
    %101 = arith.mulf %99, %100 : vector<6x2xf32>
    %102 = vector.broadcast %3 : vector<6x1xf32> to vector<6x2xf32>
    %103 = arith.addf %101, %102 : vector<6x2xf32>
    %104 = vector.extract_strided_slice %97 {offsets = [1, 0], sizes = [1, 2], strides = [1, 1]} : vector<5x2xf32> to vector<1x2xf32>
    %105 = vector.broadcast %6 : vector<6x1xf32> to vector<6x2xf32>
    %106 = vector.broadcast %104 : vector<1x2xf32> to vector<6x2xf32>
    %107 = arith.mulf %105, %106 : vector<6x2xf32>
    %108 = arith.addf %103, %107 : vector<6x2xf32>
    %109 = vector.extract_strided_slice %97 {offsets = [2, 0], sizes = [1, 2], strides = [1, 1]} : vector<5x2xf32> to vector<1x2xf32>
    %110 = vector.broadcast %7 : vector<6x1xf32> to vector<6x2xf32>
    %111 = vector.broadcast %109 : vector<1x2xf32> to vector<6x2xf32>
    %112 = arith.mulf %110, %111 : vector<6x2xf32>
    %113 = arith.addf %108, %112 : vector<6x2xf32>
    %114 = vector.extract_strided_slice %97 {offsets = [3, 0], sizes = [1, 2], strides = [1, 1]} : vector<5x2xf32> to vector<1x2xf32>
    %115 = vector.broadcast %8 : vector<6x1xf32> to vector<6x2xf32>
    %116 = vector.broadcast %114 : vector<1x2xf32> to vector<6x2xf32>
    %117 = arith.mulf %115, %116 : vector<6x2xf32>
    %118 = arith.addf %113, %117 : vector<6x2xf32>
    %119 = vector.extract_strided_slice %97 {offsets = [4, 0], sizes = [1, 2], strides = [1, 1]} : vector<5x2xf32> to vector<1x2xf32>
    %120 = vector.broadcast %9 : vector<6x1xf32> to vector<6x2xf32>
    %121 = vector.broadcast %119 : vector<1x2xf32> to vector<6x2xf32>
    %122 = arith.mulf %120, %121 : vector<6x2xf32>
    %123 = arith.addf %118, %122 : vector<6x2xf32>
    %124 = vector.extract_strided_slice %0 {offsets = [4, 0, 0], sizes = [1, 5, 2], strides = [1, 1, 1]} : vector<8x5x2xf32> to vector<1x5x2xf32>
    %125 = vector.shape_cast %124 : vector<1x5x2xf32> to vector<5x2xf32>
    %126 = vector.extract_strided_slice %125 {offsets = [0, 0], sizes = [1, 2], strides = [1, 1]} : vector<5x2xf32> to vector<1x2xf32>
    %127 = vector.broadcast %5 : vector<6x1xf32> to vector<6x2xf32>
    %128 = vector.broadcast %126 : vector<1x2xf32> to vector<6x2xf32>
    %129 = arith.mulf %127, %128 : vector<6x2xf32>
    %130 = vector.broadcast %3 : vector<6x1xf32> to vector<6x2xf32>
    %131 = arith.addf %129, %130 : vector<6x2xf32>
    %132 = vector.extract_strided_slice %125 {offsets = [1, 0], sizes = [1, 2], strides = [1, 1]} : vector<5x2xf32> to vector<1x2xf32>
    %133 = vector.broadcast %6 : vector<6x1xf32> to vector<6x2xf32>
    %134 = vector.broadcast %132 : vector<1x2xf32> to vector<6x2xf32>
    %135 = arith.mulf %133, %134 : vector<6x2xf32>
    %136 = arith.addf %131, %135 : vector<6x2xf32>
    %137 = vector.extract_strided_slice %125 {offsets = [2, 0], sizes = [1, 2], strides = [1, 1]} : vector<5x2xf32> to vector<1x2xf32>
    %138 = vector.broadcast %7 : vector<6x1xf32> to vector<6x2xf32>
    %139 = vector.broadcast %137 : vector<1x2xf32> to vector<6x2xf32>
    %140 = arith.mulf %138, %139 : vector<6x2xf32>
    %141 = arith.addf %136, %140 : vector<6x2xf32>
    %142 = vector.extract_strided_slice %125 {offsets = [3, 0], sizes = [1, 2], strides = [1, 1]} : vector<5x2xf32> to vector<1x2xf32>
    %143 = vector.broadcast %8 : vector<6x1xf32> to vector<6x2xf32>
    %144 = vector.broadcast %142 : vector<1x2xf32> to vector<6x2xf32>
    %145 = arith.mulf %143, %144 : vector<6x2xf32>
    %146 = arith.addf %141, %145 : vector<6x2xf32>
    %147 = vector.extract_strided_slice %125 {offsets = [4, 0], sizes = [1, 2], strides = [1, 1]} : vector<5x2xf32> to vector<1x2xf32>
    %148 = vector.broadcast %9 : vector<6x1xf32> to vector<6x2xf32>
    %149 = vector.broadcast %147 : vector<1x2xf32> to vector<6x2xf32>
    %150 = arith.mulf %148, %149 : vector<6x2xf32>
    %151 = arith.addf %146, %150 : vector<6x2xf32>
    %152 = vector.extract_strided_slice %0 {offsets = [5, 0, 0], sizes = [1, 5, 2], strides = [1, 1, 1]} : vector<8x5x2xf32> to vector<1x5x2xf32>
    %153 = vector.shape_cast %152 : vector<1x5x2xf32> to vector<5x2xf32>
    %154 = vector.extract_strided_slice %153 {offsets = [0, 0], sizes = [1, 2], strides = [1, 1]} : vector<5x2xf32> to vector<1x2xf32>
    %155 = vector.broadcast %5 : vector<6x1xf32> to vector<6x2xf32>
    %156 = vector.broadcast %154 : vector<1x2xf32> to vector<6x2xf32>
    %157 = arith.mulf %155, %156 : vector<6x2xf32>
    %158 = vector.broadcast %3 : vector<6x1xf32> to vector<6x2xf32>
    %159 = arith.addf %157, %158 : vector<6x2xf32>
    %160 = vector.extract_strided_slice %153 {offsets = [1, 0], sizes = [1, 2], strides = [1, 1]} : vector<5x2xf32> to vector<1x2xf32>
    %161 = vector.broadcast %6 : vector<6x1xf32> to vector<6x2xf32>
    %162 = vector.broadcast %160 : vector<1x2xf32> to vector<6x2xf32>
    %163 = arith.mulf %161, %162 : vector<6x2xf32>
    %164 = arith.addf %159, %163 : vector<6x2xf32>
    %165 = vector.extract_strided_slice %153 {offsets = [2, 0], sizes = [1, 2], strides = [1, 1]} : vector<5x2xf32> to vector<1x2xf32>
    %166 = vector.broadcast %7 : vector<6x1xf32> to vector<6x2xf32>
    %167 = vector.broadcast %165 : vector<1x2xf32> to vector<6x2xf32>
    %168 = arith.mulf %166, %167 : vector<6x2xf32>
    %169 = arith.addf %164, %168 : vector<6x2xf32>
    %170 = vector.extract_strided_slice %153 {offsets = [3, 0], sizes = [1, 2], strides = [1, 1]} : vector<5x2xf32> to vector<1x2xf32>
    %171 = vector.broadcast %8 : vector<6x1xf32> to vector<6x2xf32>
    %172 = vector.broadcast %170 : vector<1x2xf32> to vector<6x2xf32>
    %173 = arith.mulf %171, %172 : vector<6x2xf32>
    %174 = arith.addf %169, %173 : vector<6x2xf32>
    %175 = vector.extract_strided_slice %153 {offsets = [4, 0], sizes = [1, 2], strides = [1, 1]} : vector<5x2xf32> to vector<1x2xf32>
    %176 = vector.broadcast %9 : vector<6x1xf32> to vector<6x2xf32>
    %177 = vector.broadcast %175 : vector<1x2xf32> to vector<6x2xf32>
    %178 = arith.mulf %176, %177 : vector<6x2xf32>
    %179 = arith.addf %174, %178 : vector<6x2xf32>
    %180 = vector.extract_strided_slice %0 {offsets = [6, 0, 0], sizes = [1, 5, 2], strides = [1, 1, 1]} : vector<8x5x2xf32> to vector<1x5x2xf32>
    %181 = vector.shape_cast %180 : vector<1x5x2xf32> to vector<5x2xf32>
    %182 = vector.extract_strided_slice %181 {offsets = [0, 0], sizes = [1, 2], strides = [1, 1]} : vector<5x2xf32> to vector<1x2xf32>
    %183 = vector.broadcast %5 : vector<6x1xf32> to vector<6x2xf32>
    %184 = vector.broadcast %182 : vector<1x2xf32> to vector<6x2xf32>
    %185 = arith.mulf %183, %184 : vector<6x2xf32>
    %186 = vector.broadcast %3 : vector<6x1xf32> to vector<6x2xf32>
    %187 = arith.addf %185, %186 : vector<6x2xf32>
    %188 = vector.extract_strided_slice %181 {offsets = [1, 0], sizes = [1, 2], strides = [1, 1]} : vector<5x2xf32> to vector<1x2xf32>
    %189 = vector.broadcast %6 : vector<6x1xf32> to vector<6x2xf32>
    %190 = vector.broadcast %188 : vector<1x2xf32> to vector<6x2xf32>
    %191 = arith.mulf %189, %190 : vector<6x2xf32>
    %192 = arith.addf %187, %191 : vector<6x2xf32>
    %193 = vector.extract_strided_slice %181 {offsets = [2, 0], sizes = [1, 2], strides = [1, 1]} : vector<5x2xf32> to vector<1x2xf32>
    %194 = vector.broadcast %7 : vector<6x1xf32> to vector<6x2xf32>
    %195 = vector.broadcast %193 : vector<1x2xf32> to vector<6x2xf32>
    %196 = arith.mulf %194, %195 : vector<6x2xf32>
    %197 = arith.addf %192, %196 : vector<6x2xf32>
    %198 = vector.extract_strided_slice %181 {offsets = [3, 0], sizes = [1, 2], strides = [1, 1]} : vector<5x2xf32> to vector<1x2xf32>
    %199 = vector.broadcast %8 : vector<6x1xf32> to vector<6x2xf32>
    %200 = vector.broadcast %198 : vector<1x2xf32> to vector<6x2xf32>
    %201 = arith.mulf %199, %200 : vector<6x2xf32>
    %202 = arith.addf %197, %201 : vector<6x2xf32>
    %203 = vector.extract_strided_slice %181 {offsets = [4, 0], sizes = [1, 2], strides = [1, 1]} : vector<5x2xf32> to vector<1x2xf32>
    %204 = vector.broadcast %9 : vector<6x1xf32> to vector<6x2xf32>
    %205 = vector.broadcast %203 : vector<1x2xf32> to vector<6x2xf32>
    %206 = arith.mulf %204, %205 : vector<6x2xf32>
    %207 = arith.addf %202, %206 : vector<6x2xf32>
    %208 = vector.extract_strided_slice %0 {offsets = [7, 0, 0], sizes = [1, 5, 2], strides = [1, 1, 1]} : vector<8x5x2xf32> to vector<1x5x2xf32>
    %209 = vector.shape_cast %208 : vector<1x5x2xf32> to vector<5x2xf32>
    %210 = vector.extract_strided_slice %209 {offsets = [0, 0], sizes = [1, 2], strides = [1, 1]} : vector<5x2xf32> to vector<1x2xf32>
    %211 = vector.broadcast %5 : vector<6x1xf32> to vector<6x2xf32>
    %212 = vector.broadcast %210 : vector<1x2xf32> to vector<6x2xf32>
    %213 = arith.mulf %211, %212 : vector<6x2xf32>
    %214 = vector.broadcast %3 : vector<6x1xf32> to vector<6x2xf32>
    %215 = arith.addf %213, %214 : vector<6x2xf32>
    %216 = vector.extract_strided_slice %209 {offsets = [1, 0], sizes = [1, 2], strides = [1, 1]} : vector<5x2xf32> to vector<1x2xf32>
    %217 = vector.broadcast %6 : vector<6x1xf32> to vector<6x2xf32>
    %218 = vector.broadcast %216 : vector<1x2xf32> to vector<6x2xf32>
    %219 = arith.mulf %217, %218 : vector<6x2xf32>
    %220 = arith.addf %215, %219 : vector<6x2xf32>
    %221 = vector.extract_strided_slice %209 {offsets = [2, 0], sizes = [1, 2], strides = [1, 1]} : vector<5x2xf32> to vector<1x2xf32>
    %222 = vector.broadcast %7 : vector<6x1xf32> to vector<6x2xf32>
    %223 = vector.broadcast %221 : vector<1x2xf32> to vector<6x2xf32>
    %224 = arith.mulf %222, %223 : vector<6x2xf32>
    %225 = arith.addf %220, %224 : vector<6x2xf32>
    %226 = vector.extract_strided_slice %209 {offsets = [3, 0], sizes = [1, 2], strides = [1, 1]} : vector<5x2xf32> to vector<1x2xf32>
    %227 = vector.broadcast %8 : vector<6x1xf32> to vector<6x2xf32>
    %228 = vector.broadcast %226 : vector<1x2xf32> to vector<6x2xf32>
    %229 = arith.mulf %227, %228 : vector<6x2xf32>
    %230 = arith.addf %225, %229 : vector<6x2xf32>
    %231 = vector.extract_strided_slice %209 {offsets = [4, 0], sizes = [1, 2], strides = [1, 1]} : vector<5x2xf32> to vector<1x2xf32>
    %232 = vector.broadcast %9 : vector<6x1xf32> to vector<6x2xf32>
    %233 = vector.broadcast %231 : vector<1x2xf32> to vector<6x2xf32>
    %234 = arith.mulf %232, %233 : vector<6x2xf32>
    %235 = arith.addf %230, %234 : vector<6x2xf32>
    %cst = arith.constant 0.000000e+00 : f32
    %236 = vector.broadcast %cst : f32 to vector<2x2xf32>
    %237 = vector.extract_strided_slice %236 {offsets = [0, 0], sizes = [1, 2], strides = [1, 1]} : vector<2x2xf32> to vector<1x2xf32>
    %238 = vector.broadcast %10 : vector<6x1xf32> to vector<6x2xf32>
    %239 = vector.broadcast %237 : vector<1x2xf32> to vector<6x2xf32>
    %240 = arith.mulf %238, %239 : vector<6x2xf32>
    %241 = vector.extract_strided_slice %236 {offsets = [1, 0], sizes = [1, 2], strides = [1, 1]} : vector<2x2xf32> to vector<1x2xf32>
    %242 = vector.broadcast %11 : vector<6x1xf32> to vector<6x2xf32>
    %243 = vector.broadcast %241 : vector<1x2xf32> to vector<6x2xf32>
    %244 = arith.mulf %242, %243 : vector<6x2xf32>
    %245 = arith.addf %240, %244 : vector<6x2xf32>
    %246 = vector.extract_strided_slice %39 {offsets = [0, 0], sizes = [2, 2], strides = [1, 1]} : vector<6x2xf32> to vector<2x2xf32>
    %247 = vector.extract_strided_slice %245 {offsets = [0, 0], sizes = [2, 2], strides = [1, 1]} : vector<6x2xf32> to vector<2x2xf32>
    %248 = arith.addf %246, %247 : vector<2x2xf32>
    %249 = arith.negf %248 : vector<2x2xf32>
    %250 = math.exp %249 : vector<2x2xf32>
    %cst_10 = arith.constant 1.000000e+00 : f32
    %251 = vector.broadcast %cst_10 : f32 to vector<2x2xf32>
    %252 = arith.addf %251, %250 : vector<2x2xf32>
    %253 = arith.divf %251, %252 : vector<2x2xf32>
    %254 = vector.extract_strided_slice %39 {offsets = [2, 0], sizes = [2, 2], strides = [1, 1]} : vector<6x2xf32> to vector<2x2xf32>
    %255 = vector.extract_strided_slice %245 {offsets = [2, 0], sizes = [2, 2], strides = [1, 1]} : vector<6x2xf32> to vector<2x2xf32>
    %256 = arith.addf %254, %255 : vector<2x2xf32>
    %257 = arith.negf %256 : vector<2x2xf32>
    %258 = math.exp %257 : vector<2x2xf32>
    %cst_11 = arith.constant 1.000000e+00 : f32
    %259 = vector.broadcast %cst_11 : f32 to vector<2x2xf32>
    %260 = arith.addf %259, %258 : vector<2x2xf32>
    %261 = arith.divf %259, %260 : vector<2x2xf32>
    %262 = vector.extract_strided_slice %39 {offsets = [4, 0], sizes = [2, 2], strides = [1, 1]} : vector<6x2xf32> to vector<2x2xf32>
    %263 = vector.extract_strided_slice %245 {offsets = [4, 0], sizes = [2, 2], strides = [1, 1]} : vector<6x2xf32> to vector<2x2xf32>
    %264 = vector.broadcast %4 : vector<2x1xf32> to vector<2x2xf32>
    %265 = arith.addf %263, %264 : vector<2x2xf32>
    %266 = arith.mulf %253, %265 : vector<2x2xf32>
    %267 = arith.addf %262, %266 : vector<2x2xf32>
    %268 = math.tanh %267 : vector<2x2xf32>
    %269 = arith.subf %236, %268 : vector<2x2xf32>
    %270 = arith.mulf %261, %269 : vector<2x2xf32>
    %271 = arith.addf %268, %270 : vector<2x2xf32>
    %272 = vector.extract_strided_slice %271 {offsets = [0, 0], sizes = [1, 2], strides = [1, 1]} : vector<2x2xf32> to vector<1x2xf32>
    %273 = vector.broadcast %10 : vector<6x1xf32> to vector<6x2xf32>
    %274 = vector.broadcast %272 : vector<1x2xf32> to vector<6x2xf32>
    %275 = arith.mulf %273, %274 : vector<6x2xf32>
    %276 = vector.extract_strided_slice %271 {offsets = [1, 0], sizes = [1, 2], strides = [1, 1]} : vector<2x2xf32> to vector<1x2xf32>
    %277 = vector.broadcast %11 : vector<6x1xf32> to vector<6x2xf32>
    %278 = vector.broadcast %276 : vector<1x2xf32> to vector<6x2xf32>
    %279 = arith.mulf %277, %278 : vector<6x2xf32>
    %280 = arith.addf %275, %279 : vector<6x2xf32>
    %281 = vector.extract_strided_slice %67 {offsets = [0, 0], sizes = [2, 2], strides = [1, 1]} : vector<6x2xf32> to vector<2x2xf32>
    %282 = vector.extract_strided_slice %280 {offsets = [0, 0], sizes = [2, 2], strides = [1, 1]} : vector<6x2xf32> to vector<2x2xf32>
    %283 = arith.addf %281, %282 : vector<2x2xf32>
    %284 = arith.negf %283 : vector<2x2xf32>
    %285 = math.exp %284 : vector<2x2xf32>
    %cst_12 = arith.constant 1.000000e+00 : f32
    %286 = vector.broadcast %cst_12 : f32 to vector<2x2xf32>
    %287 = arith.addf %286, %285 : vector<2x2xf32>
    %288 = arith.divf %286, %287 : vector<2x2xf32>
    %289 = vector.extract_strided_slice %67 {offsets = [2, 0], sizes = [2, 2], strides = [1, 1]} : vector<6x2xf32> to vector<2x2xf32>
    %290 = vector.extract_strided_slice %280 {offsets = [2, 0], sizes = [2, 2], strides = [1, 1]} : vector<6x2xf32> to vector<2x2xf32>
    %291 = arith.addf %289, %290 : vector<2x2xf32>
    %292 = arith.negf %291 : vector<2x2xf32>
    %293 = math.exp %292 : vector<2x2xf32>
    %cst_13 = arith.constant 1.000000e+00 : f32
    %294 = vector.broadcast %cst_13 : f32 to vector<2x2xf32>
    %295 = arith.addf %294, %293 : vector<2x2xf32>
    %296 = arith.divf %294, %295 : vector<2x2xf32>
    %297 = vector.extract_strided_slice %67 {offsets = [4, 0], sizes = [2, 2], strides = [1, 1]} : vector<6x2xf32> to vector<2x2xf32>
    %298 = vector.extract_strided_slice %280 {offsets = [4, 0], sizes = [2, 2], strides = [1, 1]} : vector<6x2xf32> to vector<2x2xf32>
    %299 = vector.broadcast %4 : vector<2x1xf32> to vector<2x2xf32>
    %300 = arith.addf %298, %299 : vector<2x2xf32>
    %301 = arith.mulf %288, %300 : vector<2x2xf32>
    %302 = arith.addf %297, %301 : vector<2x2xf32>
    %303 = math.tanh %302 : vector<2x2xf32>
    %304 = arith.subf %271, %303 : vector<2x2xf32>
    %305 = arith.mulf %296, %304 : vector<2x2xf32>
    %306 = arith.addf %303, %305 : vector<2x2xf32>
    %307 = vector.extract_strided_slice %306 {offsets = [0, 0], sizes = [1, 2], strides = [1, 1]} : vector<2x2xf32> to vector<1x2xf32>
    %308 = vector.broadcast %10 : vector<6x1xf32> to vector<6x2xf32>
    %309 = vector.broadcast %307 : vector<1x2xf32> to vector<6x2xf32>
    %310 = arith.mulf %308, %309 : vector<6x2xf32>
    %311 = vector.extract_strided_slice %306 {offsets = [1, 0], sizes = [1, 2], strides = [1, 1]} : vector<2x2xf32> to vector<1x2xf32>
    %312 = vector.broadcast %11 : vector<6x1xf32> to vector<6x2xf32>
    %313 = vector.broadcast %311 : vector<1x2xf32> to vector<6x2xf32>
    %314 = arith.mulf %312, %313 : vector<6x2xf32>
    %315 = arith.addf %310, %314 : vector<6x2xf32>
    %316 = vector.extract_strided_slice %95 {offsets = [0, 0], sizes = [2, 2], strides = [1, 1]} : vector<6x2xf32> to vector<2x2xf32>
    %317 = vector.extract_strided_slice %315 {offsets = [0, 0], sizes = [2, 2], strides = [1, 1]} : vector<6x2xf32> to vector<2x2xf32>
    %318 = arith.addf %316, %317 : vector<2x2xf32>
    %319 = arith.negf %318 : vector<2x2xf32>
    %320 = math.exp %319 : vector<2x2xf32>
    %cst_14 = arith.constant 1.000000e+00 : f32
    %321 = vector.broadcast %cst_14 : f32 to vector<2x2xf32>
    %322 = arith.addf %321, %320 : vector<2x2xf32>
    %323 = arith.divf %321, %322 : vector<2x2xf32>
    %324 = vector.extract_strided_slice %95 {offsets = [2, 0], sizes = [2, 2], strides = [1, 1]} : vector<6x2xf32> to vector<2x2xf32>
    %325 = vector.extract_strided_slice %315 {offsets = [2, 0], sizes = [2, 2], strides = [1, 1]} : vector<6x2xf32> to vector<2x2xf32>
    %326 = arith.addf %324, %325 : vector<2x2xf32>
    %327 = arith.negf %326 : vector<2x2xf32>
    %328 = math.exp %327 : vector<2x2xf32>
    %cst_15 = arith.constant 1.000000e+00 : f32
    %329 = vector.broadcast %cst_15 : f32 to vector<2x2xf32>
    %330 = arith.addf %329, %328 : vector<2x2xf32>
    %331 = arith.divf %329, %330 : vector<2x2xf32>
    %332 = vector.extract_strided_slice %95 {offsets = [4, 0], sizes = [2, 2], strides = [1, 1]} : vector<6x2xf32> to vector<2x2xf32>
    %333 = vector.extract_strided_slice %315 {offsets = [4, 0], sizes = [2, 2], strides = [1, 1]} : vector<6x2xf32> to vector<2x2xf32>
    %334 = vector.broadcast %4 : vector<2x1xf32> to vector<2x2xf32>
    %335 = arith.addf %333, %334 : vector<2x2xf32>
    %336 = arith.mulf %323, %335 : vector<2x2xf32>
    %337 = arith.addf %332, %336 : vector<2x2xf32>
    %338 = math.tanh %337 : vector<2x2xf32>
    %339 = arith.subf %306, %338 : vector<2x2xf32>
    %340 = arith.mulf %331, %339 : vector<2x2xf32>
    %341 = arith.addf %338, %340 : vector<2x2xf32>
    %342 = vector.extract_strided_slice %341 {offsets = [0, 0], sizes = [1, 2], strides = [1, 1]} : vector<2x2xf32> to vector<1x2xf32>
    %343 = vector.broadcast %10 : vector<6x1xf32> to vector<6x2xf32>
    %344 = vector.broadcast %342 : vector<1x2xf32> to vector<6x2xf32>
    %345 = arith.mulf %343, %344 : vector<6x2xf32>
    %346 = vector.extract_strided_slice %341 {offsets = [1, 0], sizes = [1, 2], strides = [1, 1]} : vector<2x2xf32> to vector<1x2xf32>
    %347 = vector.broadcast %11 : vector<6x1xf32> to vector<6x2xf32>
    %348 = vector.broadcast %346 : vector<1x2xf32> to vector<6x2xf32>
    %349 = arith.mulf %347, %348 : vector<6x2xf32>
    %350 = arith.addf %345, %349 : vector<6x2xf32>
    %351 = vector.extract_strided_slice %123 {offsets = [0, 0], sizes = [2, 2], strides = [1, 1]} : vector<6x2xf32> to vector<2x2xf32>
    %352 = vector.extract_strided_slice %350 {offsets = [0, 0], sizes = [2, 2], strides = [1, 1]} : vector<6x2xf32> to vector<2x2xf32>
    %353 = arith.addf %351, %352 : vector<2x2xf32>
    %354 = arith.negf %353 : vector<2x2xf32>
    %355 = math.exp %354 : vector<2x2xf32>
    %cst_16 = arith.constant 1.000000e+00 : f32
    %356 = vector.broadcast %cst_16 : f32 to vector<2x2xf32>
    %357 = arith.addf %356, %355 : vector<2x2xf32>
    %358 = arith.divf %356, %357 : vector<2x2xf32>
    %359 = vector.extract_strided_slice %123 {offsets = [2, 0], sizes = [2, 2], strides = [1, 1]} : vector<6x2xf32> to vector<2x2xf32>
    %360 = vector.extract_strided_slice %350 {offsets = [2, 0], sizes = [2, 2], strides = [1, 1]} : vector<6x2xf32> to vector<2x2xf32>
    %361 = arith.addf %359, %360 : vector<2x2xf32>
    %362 = arith.negf %361 : vector<2x2xf32>
    %363 = math.exp %362 : vector<2x2xf32>
    %cst_17 = arith.constant 1.000000e+00 : f32
    %364 = vector.broadcast %cst_17 : f32 to vector<2x2xf32>
    %365 = arith.addf %364, %363 : vector<2x2xf32>
    %366 = arith.divf %364, %365 : vector<2x2xf32>
    %367 = vector.extract_strided_slice %123 {offsets = [4, 0], sizes = [2, 2], strides = [1, 1]} : vector<6x2xf32> to vector<2x2xf32>
    %368 = vector.extract_strided_slice %350 {offsets = [4, 0], sizes = [2, 2], strides = [1, 1]} : vector<6x2xf32> to vector<2x2xf32>
    %369 = vector.broadcast %4 : vector<2x1xf32> to vector<2x2xf32>
    %370 = arith.addf %368, %369 : vector<2x2xf32>
    %371 = arith.mulf %358, %370 : vector<2x2xf32>
    %372 = arith.addf %367, %371 : vector<2x2xf32>
    %373 = math.tanh %372 : vector<2x2xf32>
    %374 = arith.subf %341, %373 : vector<2x2xf32>
    %375 = arith.mulf %366, %374 : vector<2x2xf32>
    %376 = arith.addf %373, %375 : vector<2x2xf32>
    %377 = vector.extract_strided_slice %376 {offsets = [0, 0], sizes = [1, 2], strides = [1, 1]} : vector<2x2xf32> to vector<1x2xf32>
    %378 = vector.broadcast %10 : vector<6x1xf32> to vector<6x2xf32>
    %379 = vector.broadcast %377 : vector<1x2xf32> to vector<6x2xf32>
    %380 = arith.mulf %378, %379 : vector<6x2xf32>
    %381 = vector.extract_strided_slice %376 {offsets = [1, 0], sizes = [1, 2], strides = [1, 1]} : vector<2x2xf32> to vector<1x2xf32>
    %382 = vector.broadcast %11 : vector<6x1xf32> to vector<6x2xf32>
    %383 = vector.broadcast %381 : vector<1x2xf32> to vector<6x2xf32>
    %384 = arith.mulf %382, %383 : vector<6x2xf32>
    %385 = arith.addf %380, %384 : vector<6x2xf32>
    %386 = vector.extract_strided_slice %151 {offsets = [0, 0], sizes = [2, 2], strides = [1, 1]} : vector<6x2xf32> to vector<2x2xf32>
    %387 = vector.extract_strided_slice %385 {offsets = [0, 0], sizes = [2, 2], strides = [1, 1]} : vector<6x2xf32> to vector<2x2xf32>
    %388 = arith.addf %386, %387 : vector<2x2xf32>
    %389 = arith.negf %388 : vector<2x2xf32>
    %390 = math.exp %389 : vector<2x2xf32>
    %cst_18 = arith.constant 1.000000e+00 : f32
    %391 = vector.broadcast %cst_18 : f32 to vector<2x2xf32>
    %392 = arith.addf %391, %390 : vector<2x2xf32>
    %393 = arith.divf %391, %392 : vector<2x2xf32>
    %394 = vector.extract_strided_slice %151 {offsets = [2, 0], sizes = [2, 2], strides = [1, 1]} : vector<6x2xf32> to vector<2x2xf32>
    %395 = vector.extract_strided_slice %385 {offsets = [2, 0], sizes = [2, 2], strides = [1, 1]} : vector<6x2xf32> to vector<2x2xf32>
    %396 = arith.addf %394, %395 : vector<2x2xf32>
    %397 = arith.negf %396 : vector<2x2xf32>
    %398 = math.exp %397 : vector<2x2xf32>
    %cst_19 = arith.constant 1.000000e+00 : f32
    %399 = vector.broadcast %cst_19 : f32 to vector<2x2xf32>
    %400 = arith.addf %399, %398 : vector<2x2xf32>
    %401 = arith.divf %399, %400 : vector<2x2xf32>
    %402 = vector.extract_strided_slice %151 {offsets = [4, 0], sizes = [2, 2], strides = [1, 1]} : vector<6x2xf32> to vector<2x2xf32>
    %403 = vector.extract_strided_slice %385 {offsets = [4, 0], sizes = [2, 2], strides = [1, 1]} : vector<6x2xf32> to vector<2x2xf32>
    %404 = vector.broadcast %4 : vector<2x1xf32> to vector<2x2xf32>
    %405 = arith.addf %403, %404 : vector<2x2xf32>
    %406 = arith.mulf %393, %405 : vector<2x2xf32>
    %407 = arith.addf %402, %406 : vector<2x2xf32>
    %408 = math.tanh %407 : vector<2x2xf32>
    %409 = arith.subf %376, %408 : vector<2x2xf32>
    %410 = arith.mulf %401, %409 : vector<2x2xf32>
    %411 = arith.addf %408, %410 : vector<2x2xf32>
    %412 = vector.extract_strided_slice %411 {offsets = [0, 0], sizes = [1, 2], strides = [1, 1]} : vector<2x2xf32> to vector<1x2xf32>
    %413 = vector.broadcast %10 : vector<6x1xf32> to vector<6x2xf32>
    %414 = vector.broadcast %412 : vector<1x2xf32> to vector<6x2xf32>
    %415 = arith.mulf %413, %414 : vector<6x2xf32>
    %416 = vector.extract_strided_slice %411 {offsets = [1, 0], sizes = [1, 2], strides = [1, 1]} : vector<2x2xf32> to vector<1x2xf32>
    %417 = vector.broadcast %11 : vector<6x1xf32> to vector<6x2xf32>
    %418 = vector.broadcast %416 : vector<1x2xf32> to vector<6x2xf32>
    %419 = arith.mulf %417, %418 : vector<6x2xf32>
    %420 = arith.addf %415, %419 : vector<6x2xf32>
    %421 = vector.extract_strided_slice %179 {offsets = [0, 0], sizes = [2, 2], strides = [1, 1]} : vector<6x2xf32> to vector<2x2xf32>
    %422 = vector.extract_strided_slice %420 {offsets = [0, 0], sizes = [2, 2], strides = [1, 1]} : vector<6x2xf32> to vector<2x2xf32>
    %423 = arith.addf %421, %422 : vector<2x2xf32>
    %424 = arith.negf %423 : vector<2x2xf32>
    %425 = math.exp %424 : vector<2x2xf32>
    %cst_20 = arith.constant 1.000000e+00 : f32
    %426 = vector.broadcast %cst_20 : f32 to vector<2x2xf32>
    %427 = arith.addf %426, %425 : vector<2x2xf32>
    %428 = arith.divf %426, %427 : vector<2x2xf32>
    %429 = vector.extract_strided_slice %179 {offsets = [2, 0], sizes = [2, 2], strides = [1, 1]} : vector<6x2xf32> to vector<2x2xf32>
    %430 = vector.extract_strided_slice %420 {offsets = [2, 0], sizes = [2, 2], strides = [1, 1]} : vector<6x2xf32> to vector<2x2xf32>
    %431 = arith.addf %429, %430 : vector<2x2xf32>
    %432 = arith.negf %431 : vector<2x2xf32>
    %433 = math.exp %432 : vector<2x2xf32>
    %cst_21 = arith.constant 1.000000e+00 : f32
    %434 = vector.broadcast %cst_21 : f32 to vector<2x2xf32>
    %435 = arith.addf %434, %433 : vector<2x2xf32>
    %436 = arith.divf %434, %435 : vector<2x2xf32>
    %437 = vector.extract_strided_slice %179 {offsets = [4, 0], sizes = [2, 2], strides = [1, 1]} : vector<6x2xf32> to vector<2x2xf32>
    %438 = vector.extract_strided_slice %420 {offsets = [4, 0], sizes = [2, 2], strides = [1, 1]} : vector<6x2xf32> to vector<2x2xf32>
    %439 = vector.broadcast %4 : vector<2x1xf32> to vector<2x2xf32>
    %440 = arith.addf %438, %439 : vector<2x2xf32>
    %441 = arith.mulf %428, %440 : vector<2x2xf32>
    %442 = arith.addf %437, %441 : vector<2x2xf32>
    %443 = math.tanh %442 : vector<2x2xf32>
    %444 = arith.subf %411, %443 : vector<2x2xf32>
    %445 = arith.mulf %436, %444 : vector<2x2xf32>
    %446 = arith.addf %443, %445 : vector<2x2xf32>
    %447 = vector.extract_strided_slice %446 {offsets = [0, 0], sizes = [1, 2], strides = [1, 1]} : vector<2x2xf32> to vector<1x2xf32>
    %448 = vector.broadcast %10 : vector<6x1xf32> to vector<6x2xf32>
    %449 = vector.broadcast %447 : vector<1x2xf32> to vector<6x2xf32>
    %450 = arith.mulf %448, %449 : vector<6x2xf32>
    %451 = vector.extract_strided_slice %446 {offsets = [1, 0], sizes = [1, 2], strides = [1, 1]} : vector<2x2xf32> to vector<1x2xf32>
    %452 = vector.broadcast %11 : vector<6x1xf32> to vector<6x2xf32>
    %453 = vector.broadcast %451 : vector<1x2xf32> to vector<6x2xf32>
    %454 = arith.mulf %452, %453 : vector<6x2xf32>
    %455 = arith.addf %450, %454 : vector<6x2xf32>
    %456 = vector.extract_strided_slice %207 {offsets = [0, 0], sizes = [2, 2], strides = [1, 1]} : vector<6x2xf32> to vector<2x2xf32>
    %457 = vector.extract_strided_slice %455 {offsets = [0, 0], sizes = [2, 2], strides = [1, 1]} : vector<6x2xf32> to vector<2x2xf32>
    %458 = arith.addf %456, %457 : vector<2x2xf32>
    %459 = arith.negf %458 : vector<2x2xf32>
    %460 = math.exp %459 : vector<2x2xf32>
    %cst_22 = arith.constant 1.000000e+00 : f32
    %461 = vector.broadcast %cst_22 : f32 to vector<2x2xf32>
    %462 = arith.addf %461, %460 : vector<2x2xf32>
    %463 = arith.divf %461, %462 : vector<2x2xf32>
    %464 = vector.extract_strided_slice %207 {offsets = [2, 0], sizes = [2, 2], strides = [1, 1]} : vector<6x2xf32> to vector<2x2xf32>
    %465 = vector.extract_strided_slice %455 {offsets = [2, 0], sizes = [2, 2], strides = [1, 1]} : vector<6x2xf32> to vector<2x2xf32>
    %466 = arith.addf %464, %465 : vector<2x2xf32>
    %467 = arith.negf %466 : vector<2x2xf32>
    %468 = math.exp %467 : vector<2x2xf32>
    %cst_23 = arith.constant 1.000000e+00 : f32
    %469 = vector.broadcast %cst_23 : f32 to vector<2x2xf32>
    %470 = arith.addf %469, %468 : vector<2x2xf32>
    %471 = arith.divf %469, %470 : vector<2x2xf32>
    %472 = vector.extract_strided_slice %207 {offsets = [4, 0], sizes = [2, 2], strides = [1, 1]} : vector<6x2xf32> to vector<2x2xf32>
    %473 = vector.extract_strided_slice %455 {offsets = [4, 0], sizes = [2, 2], strides = [1, 1]} : vector<6x2xf32> to vector<2x2xf32>
    %474 = vector.broadcast %4 : vector<2x1xf32> to vector<2x2xf32>
    %475 = arith.addf %473, %474 : vector<2x2xf32>
    %476 = arith.mulf %463, %475 : vector<2x2xf32>
    %477 = arith.addf %472, %476 : vector<2x2xf32>
    %478 = math.tanh %477 : vector<2x2xf32>
    %479 = arith.subf %446, %478 : vector<2x2xf32>
    %480 = arith.mulf %471, %479 : vector<2x2xf32>
    %481 = arith.addf %478, %480 : vector<2x2xf32>
    %482 = vector.extract_strided_slice %481 {offsets = [0, 0], sizes = [1, 2], strides = [1, 1]} : vector<2x2xf32> to vector<1x2xf32>
    %483 = vector.broadcast %10 : vector<6x1xf32> to vector<6x2xf32>
    %484 = vector.broadcast %482 : vector<1x2xf32> to vector<6x2xf32>
    %485 = arith.mulf %483, %484 : vector<6x2xf32>
    %486 = vector.extract_strided_slice %481 {offsets = [1, 0], sizes = [1, 2], strides = [1, 1]} : vector<2x2xf32> to vector<1x2xf32>
    %487 = vector.broadcast %11 : vector<6x1xf32> to vector<6x2xf32>
    %488 = vector.broadcast %486 : vector<1x2xf32> to vector<6x2xf32>
    %489 = arith.mulf %487, %488 : vector<6x2xf32>
    %490 = arith.addf %485, %489 : vector<6x2xf32>
    %491 = vector.extract_strided_slice %235 {offsets = [0, 0], sizes = [2, 2], strides = [1, 1]} : vector<6x2xf32> to vector<2x2xf32>
    %492 = vector.extract_strided_slice %490 {offsets = [0, 0], sizes = [2, 2], strides = [1, 1]} : vector<6x2xf32> to vector<2x2xf32>
    %493 = arith.addf %491, %492 : vector<2x2xf32>
    %494 = arith.negf %493 : vector<2x2xf32>
    %495 = math.exp %494 : vector<2x2xf32>
    %cst_24 = arith.constant 1.000000e+00 : f32
    %496 = vector.broadcast %cst_24 : f32 to vector<2x2xf32>
    %497 = arith.addf %496, %495 : vector<2x2xf32>
    %498 = arith.divf %496, %497 : vector<2x2xf32>
    %499 = vector.extract_strided_slice %235 {offsets = [2, 0], sizes = [2, 2], strides = [1, 1]} : vector<6x2xf32> to vector<2x2xf32>
    %500 = vector.extract_strided_slice %490 {offsets = [2, 0], sizes = [2, 2], strides = [1, 1]} : vector<6x2xf32> to vector<2x2xf32>
    %501 = arith.addf %499, %500 : vector<2x2xf32>
    %502 = arith.negf %501 : vector<2x2xf32>
    %503 = math.exp %502 : vector<2x2xf32>
    %cst_25 = arith.constant 1.000000e+00 : f32
    %504 = vector.broadcast %cst_25 : f32 to vector<2x2xf32>
    %505 = arith.addf %504, %503 : vector<2x2xf32>
    %506 = arith.divf %504, %505 : vector<2x2xf32>
    %507 = vector.extract_strided_slice %235 {offsets = [4, 0], sizes = [2, 2], strides = [1, 1]} : vector<6x2xf32> to vector<2x2xf32>
    %508 = vector.extract_strided_slice %490 {offsets = [4, 0], sizes = [2, 2], strides = [1, 1]} : vector<6x2xf32> to vector<2x2xf32>
    %509 = vector.broadcast %4 : vector<2x1xf32> to vector<2x2xf32>
    %510 = arith.addf %508, %509 : vector<2x2xf32>
    %511 = arith.mulf %498, %510 : vector<2x2xf32>
    %512 = arith.addf %507, %511 : vector<2x2xf32>
    %513 = math.tanh %512 : vector<2x2xf32>
    %514 = arith.subf %481, %513 : vector<2x2xf32>
    %515 = arith.mulf %506, %514 : vector<2x2xf32>
    %516 = arith.addf %513, %515 : vector<2x2xf32>
    %cst_26 = arith.constant 0.000000e+00 : f32
    %517 = vector.broadcast %cst_26 : f32 to vector<2x2xf32>
    %518 = arith.maximumf %516, %517 : vector<2x2xf32>
    %c0_27 = arith.constant 0 : index
    %c0_28 = arith.constant 0 : index
    %519 = vector.load %arg6[%c0_27, %c0_28] : memref<128x2xf32, #tpu.memory_space<vmem>>, vector<128x2xf32>
    %520 = vector.extract_strided_slice %519 {offsets = [0, 0], sizes = [128, 1], strides = [1, 1]} : vector<128x2xf32> to vector<128x1xf32>
    %521 = vector.extract_strided_slice %518 {offsets = [0, 0], sizes = [1, 2], strides = [1, 1]} : vector<2x2xf32> to vector<1x2xf32>
    %522 = vector.broadcast %520 : vector<128x1xf32> to vector<128x2xf32>
    %523 = vector.broadcast %521 : vector<1x2xf32> to vector<128x2xf32>
    %524 = arith.mulf %522, %523 : vector<128x2xf32>
    %525 = vector.extract_strided_slice %519 {offsets = [0, 1], sizes = [128, 1], strides = [1, 1]} : vector<128x2xf32> to vector<128x1xf32>
    %526 = vector.extract_strided_slice %518 {offsets = [1, 0], sizes = [1, 2], strides = [1, 1]} : vector<2x2xf32> to vector<1x2xf32>
    %527 = vector.broadcast %525 : vector<128x1xf32> to vector<128x2xf32>
    %528 = vector.broadcast %526 : vector<1x2xf32> to vector<128x2xf32>
    %529 = arith.mulf %527, %528 : vector<128x2xf32>
    %530 = arith.addf %524, %529 : vector<128x2xf32>
    %c0_29 = arith.constant 0 : index
    %c0_30 = arith.constant 0 : index
    %531 = vector.load %arg7[%c0_29, %c0_30] : memref<128x1xf32, #tpu.memory_space<vmem>>, vector<128x1xf32>
    %532 = vector.broadcast %531 : vector<128x1xf32> to vector<128x2xf32>
    %533 = arith.addf %530, %532 : vector<128x2xf32>
    %cst_31 = arith.constant 0.000000e+00 : f32
    %534 = vector.broadcast %cst_31 : f32 to vector<128x2xf32>
    %535 = arith.maximumf %533, %534 : vector<128x2xf32>
    %c0_32 = arith.constant 0 : index
    %c0_33 = arith.constant 0 : index
    %536 = vector.load %arg8[%c0_32, %c0_33] : memref<128x1xf32, #tpu.memory_space<vmem>>, vector<128x1xf32>
    %537 = vector.broadcast %536 : vector<128x1xf32> to vector<128x2xf32>
    %538 = arith.mulf %535, %537 : vector<128x2xf32>
    %cst_34 = arith.constant dense<0.000000e+00> : vector<2xf32>
    %539 = vector.multi_reduction <add>, %538, %cst_34 [0] : vector<128x2xf32> to vector<2xf32>
    %540 = vector.shape_cast %539 : vector<2xf32> to vector<1x2xf32>
    %c0_35 = arith.constant 0 : index
    %c0_36 = arith.constant 0 : index
    %541 = vector.load %arg9[%c0_35, %c0_36] : memref<1x1xf32, #tpu.memory_space<vmem>>, vector<1x1xf32>
    %542 = vector.broadcast %541 : vector<1x1xf32> to vector<1x2xf32>
    %543 = arith.addf %540, %542 : vector<1x2xf32>
    %c0_37 = arith.constant 0 : index
    %c0_38 = arith.constant 0 : index
    %544 = vector.load %arg10[%c0_37, %c0_38] : memref<1x2xf32, #tpu.memory_space<vmem>>, vector<1x2xf32>
    tpu.vector_store %arg10[%c0_37, %c0_38], %543 {strides = array<i32>} : memref<1x2xf32, #tpu.memory_space<vmem>>, vector<1x2xf32>,
    return
  }
  func.func @transform_0(%arg0: i32) -> (i32, i32, i32) {
    %c0_i32 = arith.constant 0 : i32
    %c0_i32_0 = arith.constant 0 : i32
    %c0_i32_1 = arith.constant 0 : i32
    return %c0_i32, %c0_i32_0, %arg0 : i32, i32, i32
  }
  func.func @transform_1(%arg0: i32) -> (i32, i32) {
    %c0_i32 = arith.constant 0 : i32
    %c0_i32_0 = arith.constant 0 : i32
    %c0_i32_1 = arith.constant 0 : i32
    return %c0_i32, %c0_i32_0 : i32, i32
  }
  func.func @transform_2(%arg0: i32) -> (i32, i32) {
    %c0_i32 = arith.constant 0 : i32
    %c0_i32_0 = arith.constant 0 : i32
    %c0_i32_1 = arith.constant 0 : i32
    return %c0_i32, %c0_i32_0 : i32, i32
  }
  func.func @transform_3(%arg0: i32) -> (i32, i32) {
    %c0_i32 = arith.constant 0 : i32
    %c0_i32_0 = arith.constant 0 : i32
    %c0_i32_1 = arith.constant 0 : i32
    return %c0_i32, %c0_i32_0 : i32, i32
  }
  func.func @transform_4(%arg0: i32) -> (i32, i32) {
    %c0_i32 = arith.constant 0 : i32
    %c0_i32_0 = arith.constant 0 : i32
    %c0_i32_1 = arith.constant 0 : i32
    return %c0_i32, %c0_i32_0 : i32, i32
  }
  func.func @transform_5(%arg0: i32) -> (i32, i32) {
    %c0_i32 = arith.constant 0 : i32
    %c0_i32_0 = arith.constant 0 : i32
    %c0_i32_1 = arith.constant 0 : i32
    return %c0_i32, %c0_i32_0 : i32, i32
  }
  func.func @transform_6(%arg0: i32) -> (i32, i32) {
    %c0_i32 = arith.constant 0 : i32
    %c0_i32_0 = arith.constant 0 : i32
    %c0_i32_1 = arith.constant 0 : i32
    return %c0_i32, %c0_i32_0 : i32, i32
  }
  func.func @transform_7(%arg0: i32) -> (i32, i32) {
    %c0_i32 = arith.constant 0 : i32
    %c0_i32_0 = arith.constant 0 : i32
    %c0_i32_1 = arith.constant 0 : i32
    return %c0_i32, %c0_i32_0 : i32, i32
  }
  func.func @transform_8(%arg0: i32) -> (i32, i32) {
    %c0_i32 = arith.constant 0 : i32
    %c0_i32_0 = arith.constant 0 : i32
    %c0_i32_1 = arith.constant 0 : i32
    return %c0_i32, %c0_i32_0 : i32, i32
  }
  func.func @transform_9(%arg0: i32) -> (i32, i32) {
    %c0_i32 = arith.constant 0 : i32
    %c0_i32_0 = arith.constant 0 : i32
    return %c0_i32, %arg0 : i32, i32
  }
}

</mosaic_0001>

<bundles_post_ra>
// kernel: tpu_custom_call.1
= control target key start
LH: loop header
LB: loop body
LE: loop exit
PB: predicated region body
PF: predicated region fallthrough
CT: control target
= control target key end

     0   :  { %s1911_s0 = inlined_call_operand.vmem [shape: f32[8,5,2], index: 0, kind: input, shape index: {}]   ;;  %s1912_s1 = inlined_call_operand.vmem [shape: f32[6,5], index: 1, kind: input, shape index: {}]   ;;  %s1913_s2 = inlined_call_operand.vmem [shape: f32[6,2], index: 2, kind: input, shape index: {}]   ;;  %s1914_s3 = inlined_call_operand.vmem [shape: f32[6,1], index: 3, kind: input, shape index: {}]   ;;  %s1915_s4 = inlined_call_operand.vmem [shape: f32[2,1], index: 4, kind: input, shape index: {}]   ;;  %s1916_s5 = inlined_call_operand.vmem [shape: f32[128,2], index: 5, kind: input, shape index: {}]   ;;  %s1917_s6 = inlined_call_operand.vmem [shape: f32[128,1], index: 6, kind: input, shape index: {}]   ;;  %s1918_s7 = inlined_call_operand.vmem [shape: f32[128,1], index: 7, kind: input, shape index: {}]   ;;  %s1919_s8 = inlined_call_operand.<no memory space> [shape: f32[1,1], index: 8, kind: input, shape index: {}]   ;;  %s1920_s9 = inlined_call_operand.hbm [shape: f32[1,2], index: 9, kind: output, shape index: {}]  }
   0x1   :  { %v14_v0 = vstv %s1919_s8 }
   0x2   :  { %15 = vst [vmem:[#allocation2] sm:$0x1] %v14_v0 }
   0x3   :  { %v43_v1 = vld [vmem:[%s1912_s1] sm:$0x3f]  ;;  %v1232_v2 = vmov 1   ;;  %v1921_v3 = vmov 0   ;;  %v1234_v5 = vmov 2  }
   0x4   :  { %1153 = vset.pattern.permute.xlu1 %v1232_v2  ;;  %1152 = vset.pattern.permute.xlu0 %v1921_v3  ;;  %v45_v4 = vld [vmem:[%s1914_s3] sm:$0x3f] }
   0x5   :  { %64 = vperm.xlu1 %1153, %v43_v1   ;;  %49 = vperm.xlu0 %1152, %v43_v1  }
   0x9   :  { %1154 = vset.pattern.permute.xlu1 %v1234_v5  ;;  %59 = vperm.xlu0 %1152, %v45_v4  }
   0xa   :  { %74 = vperm.xlu1 %1154, %v43_v1  }
   0xb   :  { %16 = vsyncpa [#allocation4], 0  ;;  %v1235_v6 = vmov 3   ;;  %v1236_v7 = vmov 4   ;;  %v44_v8 = vld [vmem:[%s1913_s2] sm:$0x3f]  ;;  %v52_v19 = vlaneseq }
   0xc   :  { %v617_v9 = vld [vmem:[%s1916_s5] sm:$0xff]  ;;  %v620_v11 = vld [vmem:[%s1916_s5 + $0x18] sm:$0xff]  ;;  %v622_v12 = vld [vmem:[%s1916_s5 + $0x28] sm:$0xff]  ;;  %vm1073_vm0 = vcmask 15360   ;;  %vm1122_vm1 = vcmask 8192  }
   0xd   :  { %1155 = vset.pattern.permute.xlu0 %v1235_v6  ;;  %v46_v10 = vld [vmem:[%s1915_s4] sm:$0x3]  ;;  %v1317_v13 = vld [vmem:[%s1916_s5 + $0x10] sm:$0xff]  ;;  %v624_v14 = vld [vmem:[%s1916_s5 + $0x38] sm:$0xff]  ;;  %v1336_v20 = vshrl.u32 %v52_v19, 7 }
   0xe   :  { %1156 = vset.pattern.permute.xlu1 %v1236_v7  ;;  %84 = vperm.xlu0 %1155, %v43_v1   ;;  %v626_v15 = vld [vmem:[%s1916_s5 + $0x48] sm:$0xff]  ;;  %v628_v16 = vld [vmem:[%s1916_s5 + $0x58] sm:$0xff]  ;;  %v1342_v22 = vld [vmem:[%s1911_s0] sm:$0x1f] }
   0xf   :  { %94 = vperm.xlu1 %1156, %v43_v1   ;;  %v630_v17 = vld [vmem:[%s1916_s5 + $0x68] sm:$0xff]  ;;  %v632_v18 = vld [vmem:[%s1916_s5 + $0x78] sm:$0xff]  ;;  %v69_v21 = vsub.s32 1, %v1336_v20  ;;  %v1350_v24 = vsub.s32 0, %v1336_v20  ;;  %v1355_v25 = vld [vmem:[%s1911_s0 + $0x10] sm:$0x1f] }
  0x10   :  { %v1347_v23 = vld [vmem:[%s1911_s0 + $0x8] sm:$0x1f]  ;;  %v1360_v26 = vld [vmem:[%s1911_s0 + $0x18] sm:$0x1f]  ;;  %v1365_v27 = vld [vmem:[%s1911_s0 + $0x20] sm:$0x1f] }
  0x11   :  { %1923 = vst [vmem:[#allocation6_spill] sm:$0xff] %v1350_v24  ;;  %v1370_v28 = vld [vmem:[%s1911_s0 + $0x28] sm:$0x1f]  ;;  %v1375_v29 = vld [vmem:[%s1911_s0 + $0x30] sm:$0x1f]  ;;  %v70_v31 = vrot.slane %v1342_v22, %v69_v21  ;;  %v112_v32 = vrot.slane %v1347_v23, %v69_v21  ;;  %v142_v33 = vrot.slane %v1355_v25, %v69_v21  ;;  %v172_v34 = vrot.slane %v1360_v26, %v69_v21 }
  0x12   :  { %1158 = vset.pattern.permute.xlu0 %v1232_v2  ;;  %v1380_v30 = vld [vmem:[%s1911_s0 + $0x38] sm:$0x1f]  ;;  %v202_v35 = vrot.slane %v1365_v27, %v69_v21  ;;  %v1388_v36 = vsub.s32 2, %v1336_v20  ;;  %v232_v37 = vrot.slane %v1370_v28, %v69_v21  ;;  %v262_v38 = vrot.slane %v1375_v29, %v69_v21 }
  0x13   :  { %1157 = vset.pattern.permute.xlu1 %v1921_v3  ;;  %320 = vperm.xlu0 %1158, %v44_v8   ;;  %v292_v39 = vrot.slane %v1380_v30, %v69_v21  ;;  %v55_v40 = vrot.slane %v1342_v22, %v1350_v24  ;;  %v106_v41 = vrot.slane %v1347_v23, %v1350_v24  ;;  %v1402_v44 = vsub.s32 3, %v1336_v20 }
  0x14   :  { %315 = vperm.xlu1 %1157, %v44_v8   ;;  %v136_v42 = vrot.slane %v1355_v25, %v1350_v24  ;;  %v166_v43 = vrot.slane %v1360_v26, %v1350_v24  ;;  %v196_v45 = vrot.slane %v1365_v27, %v1350_v24  ;;  %v226_v46 = vrot.slane %v1370_v28, %v1350_v24 }
  0x15   :  { %v256_v47 = vrot.slane %v1375_v29, %v1350_v24  ;;  %v286_v48 = vrot.slane %v1380_v30, %v1350_v24  ;;  %v80_v49 = vrot.slane %v1342_v22, %v1388_v36  ;;  %v118_v50 = vrot.slane %v1347_v23, %v1388_v36 }
  0x16   :  { %v148_v51 = vrot.slane %v1355_v25, %v1388_v36  ;;  %v1419_v52 = vsub.s32 4, %v1336_v20  ;;  %v178_v53 = vrot.slane %v1360_v26, %v1388_v36  ;;  %v208_v54 = vrot.slane %v1365_v27, %v1388_v36 }
  0x17   :  { %734 = vperm.xlu0 %1158, %v617_v9   ;;  %v238_v55 = vrot.slane %v1370_v28, %v1388_v36  ;;  %v268_v56 = vrot.slane %v1375_v29, %v1388_v36  ;;  %v298_v57 = vrot.slane %v1380_v30, %v1388_v36  ;;  %v90_v58 = vrot.slane %v1342_v22, %v1402_v44 }
  0x18   :  { %334 = vperm.xlu1 %1157, %v46_v10   ;;  %v124_v59 = vrot.slane %v1347_v23, %v1402_v44  ;;  %v154_v60 = vrot.slane %v1355_v25, %v1402_v44  ;;  %v184_v61 = vrot.slane %v1360_v26, %v1402_v44  ;;  %v214_v62 = vrot.slane %v1365_v27, %v1402_v44 }
  0x1b   :  { %746 = vperm.xlu0 %1158, %v620_v11  }
  0x1c   :  { %635 = vperm.xlu1 %1157, %v617_v9  }
  0x1f   :  { %754 = vperm.xlu0 %1158, %v622_v12  }
  0x20   :  { %645 = vperm.xlu1 %1157, %v1317_v13  }
  0x23   :  { %762 = vperm.xlu0 %1158, %v624_v14  }
  0x24   :  { %650 = vperm.xlu1 %1157, %v620_v11  }
  0x27   :  { %770 = vperm.xlu0 %1158, %v626_v15  }
  0x28   :  { %660 = vperm.xlu1 %1157, %v622_v12  }
  0x2b   :  { %778 = vperm.xlu0 %1158, %v628_v16  }
  0x2c   :  { %670 = vperm.xlu1 %1157, %v624_v14  }
  0x2f   :  { %786 = vperm.xlu0 %1158, %v630_v17  }
  0x30   :  { %680 = vperm.xlu1 %1157, %v626_v15  }
  0x33   :  { %794 = vperm.xlu0 %1158, %v632_v18  }
  0x34   :  { %690 = vperm.xlu1 %1157, %v628_v16  }
  0x37   :  { %1160 = vset.pattern.permute.xlu0 %v1921_v3 }
  0x38   :  { %700 = vperm.xlu1 %1157, %v630_v17  }
  0x3c   :  { %710 = vperm.xlu1 %1157, %v632_v18  }
  0x40   :  { %1159 = vset.pattern.permute.xlu1 %v1232_v2 }
  0x80   :  { %v65_v6 = vpop.permute.xlu1 %64  ;;  %v50_v7 = vpop.permute.xlu0 %49 }
  0x81   :  { %v71_v12 = vmul.f32 %v70_v31, %v65_v6  ;;  %v113_v14 = vmul.f32 %v112_v32, %v65_v6  ;;  %v143_v15 = vmul.f32 %v142_v33, %v65_v6  ;;  %v173_v16 = vmul.f32 %v172_v34, %v65_v6 }
  0x82   :  { %v203_v17 = vmul.f32 %v202_v35, %v65_v6  ;;  %v233_v18 = vmul.f32 %v232_v37, %v65_v6  ;;  %v263_v19 = vmul.f32 %v262_v38, %v65_v6  ;;  %v293_v21 = vmul.f32 %v292_v39, %v65_v6 }
  0x83   :  { %v56_v36 = vmul.f32 %v55_v40, %v50_v7  ;;  %v107_v3 = vmul.f32 %v106_v41, %v50_v7  ;;  %v137_v8 = vmul.f32 %v136_v42, %v50_v7  ;;  %v167_v5 = vmul.f32 %v166_v43, %v50_v7 }
  0x84   :  { %v197_v4 = vmul.f32 %v196_v45, %v50_v7  ;;  %v227_v9 = vmul.f32 %v226_v46, %v50_v7  ;;  %v257_v2 = vmul.f32 %v256_v47, %v50_v7  ;;  %v287_v1 = vmul.f32 %v286_v48, %v50_v7  ;;  %v60_v10 = vpop.permute.xlu0 %59 }
  0x85   :  { %v62_v0 = vadd.f32 %v60_v10, %v56_v36  ;;  %v108_v63 = vadd.f32 %v107_v3, %v60_v10  ;;  %v138_v11 = vadd.f32 %v137_v8, %v60_v10  ;;  %v168_v31 = vadd.f32 %v167_v5, %v60_v10  ;;  %v75_v37 = vpop.permute.xlu1 %74 }
  0x86   :  { %v198_v32 = vadd.f32 %v197_v4, %v60_v10  ;;  %v228_v33 = vadd.f32 %v227_v9, %v60_v10  ;;  %v258_v34 = vadd.f32 %v257_v2, %v60_v10  ;;  %v288_v35 = vadd.f32 %v287_v1, %v60_v10 }
  0x87   :  { %v72_v38 = vadd.f32 %v71_v12, %v62_v0  ;;  %v114_v39 = vadd.f32 %v113_v14, %v108_v63  ;;  %v144_v40 = vadd.f32 %v143_v15, %v138_v11  ;;  %v174_v41 = vadd.f32 %v173_v16, %v168_v31 }
  0x88   :  { %v204_v42 = vadd.f32 %v203_v17, %v198_v32  ;;  %v234_v43 = vadd.f32 %v233_v18, %v228_v33  ;;  %v264_v45 = vadd.f32 %v263_v19, %v258_v34  ;;  %v294_v46 = vadd.f32 %v293_v21, %v288_v35 }
  0x89   :  { %v81_v47 = vmul.f32 %v80_v49, %v75_v37  ;;  %v119_v48 = vmul.f32 %v118_v50, %v75_v37  ;;  %v149_v6 = vmul.f32 %v148_v51, %v75_v37  ;;  %v179_v7 = vmul.f32 %v178_v53, %v75_v37  ;;  %v85_v9 = vpop.permute.xlu0 %84 }
  0x8a   :  { %v209_v3 = vmul.f32 %v208_v54, %v75_v37  ;;  %v239_v8 = vmul.f32 %v238_v55, %v75_v37  ;;  %v269_v5 = vmul.f32 %v268_v56, %v75_v37  ;;  %v299_v4 = vmul.f32 %v298_v57, %v75_v37  ;;  %v95_v15 = vpop.permute.xlu1 %94 }
  0x8b   :  { %v82_v2 = vadd.f32 %v81_v47, %v72_v38  ;;  %v120_v1 = vadd.f32 %v119_v48, %v114_v39  ;;  %v150_v10 = vadd.f32 %v149_v6, %v144_v40  ;;  %v180_v0 = vadd.f32 %v179_v7, %v174_v41 }
  0x8c   :  { %v210_v63 = vadd.f32 %v209_v3, %v204_v42  ;;  %v240_v11 = vadd.f32 %v239_v8, %v234_v43  ;;  %v270_v12 = vadd.f32 %v269_v5, %v264_v45  ;;  %v300_v14 = vadd.f32 %v299_v4, %v294_v46 }
  0x8d   :  { %v91_v49 = vmul.f32 %v90_v58, %v85_v9  ;;  %v125_v50 = vmul.f32 %v124_v59, %v85_v9  ;;  %v155_v51 = vmul.f32 %v154_v60, %v85_v9  ;;  %v185_v53 = vmul.f32 %v184_v61, %v85_v9 }
  0x8e   :  { %v215_v54 = vmul.f32 %v214_v62, %v85_v9  ;;  %v1924_v55 = vrot.slane %v1370_v28, %v1402_v44  ;;  %v1925_v57 = vrot.slane %v1375_v29, %v1402_v44  ;;  %v1926_v59 = vrot.slane %v1380_v30, %v1402_v44  ;;  %v1508_v43 = vpop.permute.xlu0 %320 }
  0x8f   :  { %v126_v16 = vadd.f32 %v125_v50, %v120_v1  ;;  %v156_v17 = vadd.f32 %v155_v51, %v150_v10  ;;  %v186_v18 = vadd.f32 %v185_v53, %v180_v0  ;;  %v100_v61 = vrot.slane %v1342_v22, %v1419_v52 }
  0x90   :  { %v245_v56 = vmul.f32 %v1924_v55, %v85_v9  ;;  %v275_v58 = vmul.f32 %v1925_v57, %v85_v9  ;;  %v305_v60 = vmul.f32 %v1926_v59, %v85_v9  ;;  %v216_v19 = vadd.f32 %v215_v54, %v210_v63 }
  0x91   :  { %v92_v31 = vadd.f32 %v91_v49, %v82_v2  ;;  %v1927_v32 = vrot.slane %v1347_v23, %v1419_v52  ;;  %v1928_v34 = vrot.slane %v1355_v25, %v1419_v52  ;;  %v1929_v35 = vrot.slane %v1360_v26, %v1419_v52  ;;  %v1510_v26 = vpop.permute.xlu1 %315 }
  0x92   :  { %v246_v62 = vadd.f32 %v245_v56, %v240_v11  ;;  %v276_v21 = vadd.f32 %v275_v58, %v270_v12  ;;  %v306_v36 = vadd.f32 %v305_v60, %v300_v14  ;;  %v1930_v22 = vrot.slane %v1365_v27, %v1419_v52 }
  0x93   :  { %v131_v33 = vmul.f32 %v1927_v32, %v95_v15  ;;  %v161_v44 = vmul.f32 %v1928_v34, %v95_v15  ;;  %v191_v37 = vmul.f32 %v1929_v35, %v95_v15  ;;  %v1931_v39 = vrot.slane %v1370_v28, %v1419_v52 }
  0x94   :  { %v221_v38 = vmul.f32 %v1930_v22, %v95_v15  ;;  %v1932_v23 = vrot.slane %v1375_v29, %v1419_v52  ;;  %v1933_v25 = vrot.slane %v1380_v30, %v1419_v52  ;;  %v101_v45 = vmul.f32 %v100_v61, %v95_v15 }
  0x95   :  { %v251_v40 = vmul.f32 %v1931_v39, %v95_v15  ;;  %v132_v46 = vadd.f32 %v131_v33, %v126_v16  ;;  %v1512_v27 = vadd.f32 %v161_v44, %v156_v17  ;;  %v1514_v47 = vadd.f32 %v191_v37, %v186_v18  ;;  %v335_v1 = vpop.permute.xlu1 %334 }
  0x96   :  { %v281_v41 = vmul.f32 %v1932_v23, %v95_v15  ;;  %v311_v42 = vmul.f32 %v1933_v25, %v95_v15  ;;  %v1516_v28 = vadd.f32 %v221_v38, %v216_v19  ;;  %v323_v30 = vmul.f32 0.0, %v1508_v43 }
  0x97   :  { %v1518_v48 = vadd.f32 %v251_v40, %v246_v62  ;;  %v318_v7 = vmul.f32 0.0, %v1510_v26  ;;  %v102_v3 = vadd.f32 %v101_v45, %v92_v31  ;;  %v1526_v10 = vrot.slane %v335_v1, 4  ;;  %v623_v1 = vld [vmem:[%s1916_s5 + $0x30] sm:$0xff] }
  0x98   :  { %v1520_v29 = vadd.f32 %v281_v41, %v276_v21  ;;  %v1522_v6 = vadd.f32 %v311_v42, %v306_v36  ;;  %v1530_v54 = vsub.s32 5, %v1336_v20 }
  0x99   :  { %v324_v8 = vadd.f32 %v323_v30, %v318_v7  ;;  %v618_v7 = vld [vmem:[%s1916_s5 + $0x8] sm:$0xff] }
  0x9a   :  { %640 = vperm.xlu0 %1160, %v618_v7   ;;  %738 = vperm.xlu1 %1159, %v618_v7   ;;  %v847_v7 = vld [vmem:[%s1917_s6 + $0x70] sm:$0xff] }
  0x9b   :  { %v325_v5 = vadd.f32 %v324_v8, %v102_v3  ;;  %v338_v0 = vadd.f32 %v1526_v10, %v324_v8 }
  0x9d   :  { %v1138_v4 = vmul.f32 -1.442695, %v325_v5  ;;  %v340_v63 = vrot.slane %v338_v0, 4  ;;  %v625_v0 = vld [vmem:[%s1916_s5 + $0x40] sm:$0xff] }
  0x9e   :  { %742 = vperm.xlu1 %1159, %v1317_v13   ;;  %v627_v13 = vld [vmem:[%s1916_s5 + $0x50] sm:$0xff] }
  0x9f   :  { %1162 = vpow2.f32 %v1138_v4  ;;  %v621_v4 = vld [vmem:[%s1916_s5 + $0x20] sm:$0xff] }
  0xa0   :  { %655 = vperm.xlu0 %1160, %v621_v4  }
  0xa2   :  { %750 = vperm.xlu1 %1159, %v621_v4   ;;  %v968_v4 = vld [vmem:[%s1918_s7 + $0x38] sm:$0xff] }
  0xa4   :  { %665 = vperm.xlu0 %1160, %v623_v1  }
  0xa6   :  { %758 = vperm.xlu1 %1159, %v623_v1   ;;  %v970_v1 = vld [vmem:[%s1918_s7 + $0x48] sm:$0xff] }
  0xa8   :  { %675 = vperm.xlu0 %1160, %v625_v0  }
  0xaa   :  { %766 = vperm.xlu1 %1159, %v625_v0  }
  0xac   :  { %v1163_v9 = vpop.eup %1162  ;;  %685 = vperm.xlu0 %1160, %v627_v13  }
  0xad   :  { %v329_v2 = vadd.f32 1.0, %v1163_v9 }
  0xae   :  { %774 = vperm.xlu1 %1159, %v627_v13  }
  0xaf   :  { %1164 = vrcp.f32 %v329_v2 }
  0xbc   :  { %v1165_v11 = vpop.eup %1164 }
  0xbd   :  { %v342_v12 = vmul.f32 %v1165_v11, %v340_v63 }
  0xbf   :  { %v344_v14 = vrot.slane %v342_v12, 4  ;;  %v631_v12 = vld [vmem:[%s1916_s5 + $0x70] sm:$0xff] }
  0xc1   :  { %v346_v15 = vadd.f32 %v344_v14, %v102_v3 }
  0xc3   :  { %1166 = vtanh.f32 %v346_v15 }
  0xd0   :  { %v1167_v49 = vpop.eup %1166 }
  0xd1   :  { %v348_v50 = vsub.f32 0.0, %v1167_v49 }
  0xd3   :  { %v350_v51 = vrot.slane %v348_v50, 2 }
  0xd5   :  { %v352_v53 = vmul.f32 %v1165_v11, %v350_v51 }
  0xd7   :  { %v354_v55 = vrot.slane %v352_v53, 6  ;;  %v837_v53 = vld [vmem:[%s1917_s6 + $0x20] sm:$0xff] }
  0xd9   :  { %v356_v56 = vadd.f32 %v1167_v49, %v354_v55  ;;  %v834_v49 = vld [vmem:[%s1917_s6 + $0x8] sm:$0xff]  ;;  %v1934_v55 = vmov 0  }
  0xdb   :  { %v360_v57 = vrot.slane %v356_v56, %v1419_v52  ;;  %v365_v58 = vrot.slane %v356_v56, %v1530_v54 }
  0xdd   :  { %v361_v59 = vmul.f32 %v360_v57, %v1510_v26  ;;  %v366_v60 = vmul.f32 %v365_v58, %v1508_v43 }
  0xdf   :  { %v367_v16 = vadd.f32 %v366_v60, %v361_v59  ;;  %v961_v60 = vld [vmem:[%s1918_s7] sm:$0xff] }
  0xe1   :  { %v368_v17 = vadd.f32 %v367_v16, %v132_v46  ;;  %v375_v20 = vadd.f32 %v367_v16, %v1526_v10 }
  0xe3   :  { %v1139_v18 = vmul.f32 -1.442695, %v368_v17  ;;  %v377_v62 = vrot.slane %v375_v20, 4  ;;  %v833_v20 = vld [vmem:[%s1917_s6] sm:$0xff] }
  0xe5   :  { %1168 = vpow2.f32 %v1139_v18  ;;  %v963_v18 = vld [vmem:[%s1918_s7 + $0x10] sm:$0xff] }
  0xf2   :  { %v1169_v61 = vpop.eup %1168 }
  0xf3   :  { %v372_v19 = vadd.f32 1.0, %v1169_v61 }
  0xf5   :  { %1170 = vrcp.f32 %v372_v19  ;;  %v839_v19 = vld [vmem:[%s1917_s6 + $0x30] sm:$0xff] }
 0x102   :  { %v1171_v21 = vpop.eup %1170 }
 0x103   :  { %v379_v36 = vmul.f32 %v1171_v21, %v377_v62  ;;  %v840_v62 = vld [vmem:[%s1917_s6 + $0x38] sm:$0xff] }
 0x105   :  { %v381_v31 = vrot.slane %v379_v36, 4  ;;  %v841_v36 = vld [vmem:[%s1917_s6 + $0x40] sm:$0xff] }
 0x107   :  { %v383_v32 = vadd.f32 %v381_v31, %v132_v46  ;;  %v836_v31 = vld [vmem:[%s1917_s6 + $0x18] sm:$0xff] }
 0x109   :  { %1172 = vtanh.f32 %v383_v32  ;;  %v842_v32 = vld [vmem:[%s1917_s6 + $0x48] sm:$0xff] }
 0x116   :  { %v1173_v33 = vpop.eup %1172 }
 0x117   :  { %v385_v34 = vsub.f32 %v356_v56, %v1173_v33 }
 0x119   :  { %v387_v44 = vrot.slane %v385_v34, 2 }
 0x11b   :  { %v389_v35 = vmul.f32 %v1171_v21, %v387_v44  ;;  %v835_v21 = vld [vmem:[%s1917_s6 + $0x10] sm:$0xff]  ;;  %v838_v44 = vld [vmem:[%s1917_s6 + $0x28] sm:$0xff] }
 0x11d   :  { %v391_v37 = vrot.slane %v389_v35, 6  ;;  %v843_v35 = vld [vmem:[%s1917_s6 + $0x50] sm:$0xff] }
 0x11f   :  { %v393_v22 = vadd.f32 %v1173_v33, %v391_v37  ;;  %v962_v37 = vld [vmem:[%s1918_s7 + $0x8] sm:$0xff] }
 0x121   :  { %v397_v38 = vrot.slane %v393_v22, %v1419_v52  ;;  %v402_v39 = vrot.slane %v393_v22, %v1530_v54 }
 0x123   :  { %v398_v40 = vmul.f32 %v397_v38, %v1510_v26  ;;  %v403_v23 = vmul.f32 %v402_v39, %v1508_v43  ;;  %v964_v38 = vld [vmem:[%s1918_s7 + $0x18] sm:$0xff] }
 0x125   :  { %v404_v41 = vadd.f32 %v403_v23, %v398_v40  ;;  %v845_v40 = vld [vmem:[%s1917_s6 + $0x60] sm:$0xff] }
 0x126   :  { %v965_v23 = vld [vmem:[%s1918_s7 + $0x20] sm:$0xff] }
 0x127   :  { %v405_v25 = vadd.f32 %v404_v41, %v1512_v27  ;;  %v412_v30 = vadd.f32 %v404_v41, %v1526_v10 }
 0x129   :  { %v1140_v42 = vmul.f32 -1.442695, %v405_v25  ;;  %v414_v3 = vrot.slane %v412_v30, 4  ;;  %v846_v25 = vld [vmem:[%s1917_s6 + $0x68] sm:$0xff] }
 0x12b   :  { %1174 = vpow2.f32 %v1140_v42 }
 0x138   :  { %v1175_v45 = vpop.eup %1174 }
 0x139   :  { %v409_v46 = vadd.f32 1.0, %v1175_v45 }
 0x13b   :  { %1176 = vrcp.f32 %v409_v46  ;;  %v966_v46 = vld [vmem:[%s1918_s7 + $0x28] sm:$0xff] }
 0x148   :  { %v1177_v8 = vpop.eup %1176 }
 0x149   :  { %v416_v5 = vmul.f32 %v1177_v8, %v414_v3 }
 0x14b   :  { %v418_v9 = vrot.slane %v416_v5, 4  ;;  %v848_v5 = vld [vmem:[%s1917_s6 + $0x78] sm:$0xff] }
 0x14d   :  { %v420_v2 = vadd.f32 %v418_v9, %v1512_v27  ;;  %v629_v27 = vld [vmem:[%s1916_s5 + $0x60] sm:$0xff] }
 0x14e   :  { %695 = vperm.xlu0 %1160, %v629_v27   ;;  %782 = vperm.xlu1 %1159, %v629_v27   ;;  %v969_v9 = vld [vmem:[%s1918_s7 + $0x40] sm:$0xff]  ;;  %v971_v27 = vld [vmem:[%s1918_s7 + $0x50] sm:$0xff] }
 0x14f   :  { %1178 = vtanh.f32 %v420_v2  ;;  %v1111_v2 = vld [vmem:[#allocation2] sm:$0x1] }
 0x152   :  { %705 = vperm.xlu0 %1160, %v631_v12   ;;  %790 = vperm.xlu1 %1159, %v631_v12   ;;  %v972_v12 = vld [vmem:[%s1918_s7 + $0x58] sm:$0xff] }
 0x156   :  { %856 = vperm.xlu0 %1160, %v834_v49   ;;  %1161 = vset.pattern.permute.xlu1 %v1934_v55  ;;  %v973_v49 = vld [vmem:[%s1918_s7 + $0x60] sm:$0xff] }
 0x157   :  { %851 = vperm.xlu1 %1161, %v833_v20  }
 0x15a   :  { %871 = vperm.xlu0 %1160, %v837_v53  }
 0x15b   :  { %861 = vperm.xlu1 %1161, %v835_v21  }
 0x15c   :  { %v1179_v63 = vpop.eup %1178 }
 0x15d   :  { %v422_v11 = vsub.f32 %v393_v22, %v1179_v63  ;;  %v844_v22 = vld [vmem:[%s1917_s6 + $0x58] sm:$0xff] }
 0x15e   :  { %979 = vperm.xlu0 %1160, %v961_v60  }
 0x15f   :  { %v424_v14 = vrot.slane %v422_v11, 2  ;;  %866 = vperm.xlu1 %1161, %v836_v31  }
 0x161   :  { %v426_v15 = vmul.f32 %v1177_v8, %v424_v14  ;;  %v967_v8 = vld [vmem:[%s1918_s7 + $0x30] sm:$0xff] }
 0x162   :  { %989 = vperm.xlu0 %1160, %v963_v18  }
 0x163   :  { %v428_v50 = vrot.slane %v426_v15, 6  ;;  %876 = vperm.xlu1 %1161, %v838_v44  }
 0x165   :  { %v1569_v51 = vadd.f32 %v1179_v63, %v428_v50 }
 0x166   :  { %881 = vperm.xlu0 %1160, %v839_v19  }
 0x167   :  { %v434_v56 = vrot.slane %v1569_v51, %v1419_v52  ;;  %v439_v57 = vrot.slane %v1569_v51, %v1530_v54  ;;  %984 = vperm.xlu1 %1161, %v962_v37  }
 0x169   :  { %v435_v58 = vmul.f32 %v434_v56, %v1510_v26  ;;  %v440_v59 = vmul.f32 %v439_v57, %v1508_v43  ;;  %v974_v56 = vld [vmem:[%s1918_s7 + $0x68] sm:$0xff] }
 0x16a   :  { %886 = vperm.xlu0 %1160, %v840_v62  }
 0x16b   :  { %v441_v16 = vadd.f32 %v440_v59, %v435_v58  ;;  %994 = vperm.xlu1 %1161, %v964_v38   ;;  %v976_v59 = vld [vmem:[%s1918_s7 + $0x78] sm:$0xff] }
 0x16d   :  { %v442_v17 = vadd.f32 %v441_v16, %v1514_v47  ;;  %v449_v39 = vadd.f32 %v441_v16, %v1526_v10 }
 0x16e   :  { %891 = vperm.xlu0 %1160, %v841_v36  }
 0x16f   :  { %v1141_v61 = vmul.f32 -1.442695, %v442_v17  ;;  %999 = vperm.xlu1 %1161, %v965_v23   ;;  %v451_v41 = vrot.slane %v449_v39, 4 }
 0x171   :  { %1180 = vpow2.f32 %v1141_v61 }
 0x172   :  { %896 = vperm.xlu0 %1160, %v842_v32  }
 0x173   :  { %1004 = vperm.xlu1 %1161, %v966_v46  }
 0x176   :  { %901 = vperm.xlu0 %1160, %v843_v35  }
 0x177   :  { %1009 = vperm.xlu1 %1161, %v967_v8   ;;  %v1689_v8 = vpop.permute.xlu1 %635 }
 0x17a   :  { %906 = vperm.xlu0 %1160, %v844_v22  }
 0x17b   :  { %1014 = vperm.xlu1 %1161, %v968_v4  }
 0x17e   :  { %v1181_v33 = vpop.eup %1180  ;;  %911 = vperm.xlu0 %1160, %v845_v40  }
 0x17f   :  { %v446_v34 = vadd.f32 1.0, %v1181_v33  ;;  %1019 = vperm.xlu1 %1161, %v969_v9   ;;  %v1691_v9 = vpop.permute.xlu1 %645 }
 0x181   :  { %1182 = vrcp.f32 %v446_v34 }
 0x182   :  { %916 = vperm.xlu0 %1160, %v846_v25  }
 0x183   :  { %1024 = vperm.xlu1 %1161, %v970_v1  }
 0x186   :  { %921 = vperm.xlu0 %1160, %v847_v7  }
 0x187   :  { %1029 = vperm.xlu1 %1161, %v971_v27   ;;  %v1695_v27 = vpop.permute.xlu1 %650 }
 0x18a   :  { %926 = vperm.xlu0 %1160, %v848_v5  }
 0x18b   :  { %1034 = vperm.xlu1 %1161, %v972_v12  }
 0x18e   :  { %v1183_v42 = vpop.eup %1182 }
 0x18f   :  { %v453_v45 = vmul.f32 %v1183_v42, %v451_v41  ;;  %1039 = vperm.xlu1 %1161, %v973_v49   ;;  %v1702_v49 = vpop.permute.xlu0 %734 }
 0x191   :  { %v455_v30 = vrot.slane %v453_v45, 4 }
 0x193   :  { %v457_v3 = vadd.f32 %v455_v30, %v1514_v47  ;;  %v975_v47 = vld [vmem:[%s1918_s7 + $0x70] sm:$0xff]  ;;  %1044 = vperm.xlu1 %1161, %v974_v56   ;;  %s1237_s7 = smov [#allocation3]  }
 0x194   :  { %1049 = vperm.xlu0 %1160, %v975_v47   ;;  %s1130_s17 = sshll.u32 %s1237_s7, 4  ;;  %s1131_s17 = int_to_ptr.vmem [resolvable:$true] %s1130_s17 }
 0x195   :  { %1184 = vtanh.f32 %v457_v3  ;;  %s1210_s18 = scalar_lea.vmem %s1131_s17, 16  ;;  %s1214_s19 = scalar_lea.vmem %s1131_s17, 32 }
 0x196   :  { %p1211_p0 = scmp.ne.s32.totalorder %s1131_s17, %s1210_s18  ;;  %p1215_p1 = scmp.lt.s32.totalorder %s1131_s17, %s1131_s17 }
 0x197   :  { %1054 = vperm.xlu1 %1161, %v976_v59   ;;  %p1216_p2 = scmp.lt.s32.totalorder %s1214_s19, %s1210_s18 }
 0x198   :  { %1114 = vperm.xlu0 %1160, %v1111_v2  }
 0x199   :  { %p1217_p3 = por %p1216_p2, %p1215_p1 }
 0x19b   :  { %p1218_p4 = pnand %p1217_p3, %p1211_p0 }
 0x1a2   :  { %v1185_v0 = vpop.eup %1184 }
 0x1a3   :  { %v459_v13 = vsub.f32 %v1569_v51, %v1185_v0 }
 0x1a5   :  { %v461_v63 = vrot.slane %v459_v13, 2 }
 0x1a7   :  { %v463_v11 = vmul.f32 %v1183_v42, %v461_v63 }
 0x1a9   :  { %v465_v14 = vrot.slane %v463_v11, 6 }
 0x1ab   :  { %v467_v15 = vadd.f32 %v1185_v0, %v465_v14  ;;  %v1700_v14 = vpop.permute.xlu1 %660 }
 0x1ad   :  { %v471_v50 = vrot.slane %v467_v15, %v1419_v52  ;;  %v476_v51 = vrot.slane %v467_v15, %v1530_v54 }
 0x1af   :  { %v472_v53 = vmul.f32 %v471_v50, %v1510_v26  ;;  %v477_v55 = vmul.f32 %v476_v51, %v1508_v43  ;;  %v1704_v50 = vpop.permute.xlu1 %670  ;;  %v1706_v51 = vpop.permute.xlu0 %746 }
 0x1b1   :  { %v478_v57 = vadd.f32 %v477_v55, %v472_v53 }
 0x1b3   :  { %v479_v58 = vadd.f32 %v478_v57, %v1516_v28  ;;  %v486_v18 = vadd.f32 %v478_v57, %v1526_v10  ;;  %v1708_v53 = vpop.permute.xlu1 %680  ;;  %v1710_v56 = vpop.permute.xlu0 %754 }
 0x1b5   :  { %v1142_v60 = vmul.f32 -1.442695, %v479_v58  ;;  %v488_v61 = vrot.slane %v486_v18, 4 }
 0x1b7   :  { %1186 = vpow2.f32 %v1142_v60  ;;  %v1712_v58 = vpop.permute.xlu1 %690  ;;  %v1714_v59 = vpop.permute.xlu0 %762 }
 0x1bb   :  { %v1716_v60 = vpop.permute.xlu1 %700 }
 0x1bf   :  { %v1721_v18 = vpop.permute.xlu1 %710 }
 0x1c4   :  { %v1187_v16 = vpop.eup %1186 }
 0x1c5   :  { %v483_v17 = vadd.f32 1.0, %v1187_v16 }
 0x1c7   :  { %1188 = vrcp.f32 %v483_v17  ;;  %v1719_v17 = vpop.permute.xlu0 %770 }
 0x1d4   :  { %v1189_v19 = vpop.eup %1188 }
 0x1d5   :  { %v490_v20 = vmul.f32 %v1189_v19, %v488_v61 }
 0x1d7   :  { %v492_v62 = vrot.slane %v490_v20, 4 }
 0x1d9   :  { %v494_v21 = vadd.f32 %v492_v62, %v1516_v28  ;;  %v1723_v62 = vpop.permute.xlu0 %778 }
 0x1db   :  { %1190 = vtanh.f32 %v494_v21  ;;  %v1725_v21 = vpop.permute.xlu1 %738 }
 0x1e8   :  { %v1191_v36 = vpop.eup %1190 }
 0x1e9   :  { %v496_v31 = vsub.f32 %v467_v15, %v1191_v36 }
 0x1eb   :  { %v498_v32 = vrot.slane %v496_v31, 2 }
 0x1ed   :  { %v500_v33 = vmul.f32 %v1189_v19, %v498_v32  ;;  %v1728_v32 = vpop.permute.xlu0 %786 }
 0x1ef   :  { %v502_v34 = vrot.slane %v500_v33, 6  ;;  %v1730_v33 = vpop.permute.xlu1 %742 }
 0x1f1   :  { %v504_v44 = vadd.f32 %v1191_v36, %v502_v34  ;;  %v1732_v34 = vpop.permute.xlu0 %794 }
 0x1f3   :  { %v508_v35 = vrot.slane %v504_v44, %v1419_v52  ;;  %v513_v37 = vrot.slane %v504_v44, %v1530_v54 }
 0x1f5   :  { %v509_v22 = vmul.f32 %v508_v35, %v1510_v26  ;;  %v514_v38 = vmul.f32 %v513_v37, %v1508_v43  ;;  %v1736_v35 = vpop.permute.xlu0 %640 }
 0x1f7   :  { %v515_v39 = vadd.f32 %v514_v38, %v509_v22 }
 0x1f9   :  { %v516_v40 = vadd.f32 %v515_v39, %v1518_v48  ;;  %v523_v25 = vadd.f32 %v515_v39, %v1526_v10 }
 0x1fb   :  { %v1143_v23 = vmul.f32 -1.442695, %v516_v40  ;;  %v525_v42 = vrot.slane %v523_v25, 4  ;;  %v656_v40 = vpop.permute.xlu0 %655 }
 0x1fd   :  { %1192 = vpow2.f32 %v1143_v23 }
 0x1ff   :  { %v1742_v25 = vpop.permute.xlu0 %665 }
 0x20a   :  { %v1193_v28 = vpop.eup %1192 }
 0x20b   :  { %v520_v41 = vadd.f32 1.0, %v1193_v28 }
 0x20d   :  { %1194 = vrcp.f32 %v520_v41 }
 0x21a   :  { %v1195_v45 = vpop.eup %1194 }
 0x21b   :  { %v527_v46 = vmul.f32 %v1195_v45, %v525_v42 }
 0x21d   :  { %v529_v30 = vrot.slane %v527_v46, 4 }
 0x21f   :  { %v531_v7 = vadd.f32 %v529_v30, %v1518_v48 }
 0x221   :  { %1196 = vtanh.f32 %v531_v7 }
 0x22e   :  { %v1197_v3 = vpop.eup %1196 }
 0x22f   :  { %v533_v5 = vsub.f32 %v504_v44, %v1197_v3  ;;  %v1734_v44 = vpop.permute.xlu1 %750 }
 0x231   :  { %v535_v4 = vrot.slane %v533_v5, 2  ;;  %v1750_v5 = vpop.permute.xlu0 %675 }
 0x233   :  { %v537_v47 = vmul.f32 %v1195_v45, %v535_v4  ;;  %v1738_v22 = vpop.permute.xlu1 %758 }
 0x235   :  { %v539_v2 = vrot.slane %v537_v47, 6 }
 0x237   :  { %v541_v1 = vadd.f32 %v1197_v3, %v539_v2  ;;  %v1740_v28 = vpop.permute.xlu1 %766 }
 0x239   :  { %v545_v0 = vrot.slane %v541_v1, %v1419_v52  ;;  %v550_v13 = vrot.slane %v541_v1, %v1530_v54 }
 0x23b   :  { %v546_v63 = vmul.f32 %v545_v0, %v1510_v26  ;;  %v551_v48 = vmul.f32 %v550_v13, %v1508_v43  ;;  %v1746_v46 = vpop.permute.xlu1 %774 }
 0x23d   :  { %v552_v11 = vadd.f32 %v551_v48, %v546_v63 }
 0x23f   :  { %v553_v12 = vadd.f32 %v552_v11, %v1520_v29  ;;  %v560_v16 = vadd.f32 %v552_v11, %v1526_v10  ;;  %v1753_v47 = vpop.permute.xlu1 %782 }
 0x241   :  { %v1144_v15 = vmul.f32 -1.442695, %v553_v12  ;;  %v562_v61 = vrot.slane %v560_v16, 4 }
 0x243   :  { %1198 = vpow2.f32 %v1144_v15  ;;  %v1757_v0 = vpop.permute.xlu1 %790 }
 0x247   :  { %v1761_v63 = vpop.permute.xlu1 %851 }
 0x24b   :  { %v1765_v11 = vpop.permute.xlu1 %861 }
 0x24f   :  { %v867_v15 = vpop.permute.xlu1 %866 }
 0x250   :  { %v1199_v55 = vpop.eup %1198 }
 0x251   :  { %v557_v57 = vadd.f32 1.0, %v1199_v55 }
 0x253   :  { %1200 = vrcp.f32 %v557_v57  ;;  %v1768_v16 = vpop.permute.xlu1 %876 }
 0x260   :  { %v1201_v19 = vpop.eup %1200 }
 0x261   :  { %v564_v20 = vmul.f32 %v1201_v19, %v562_v61 }
 0x263   :  { %v566_v36 = vrot.slane %v564_v20, 4 }
 0x265   :  { %v568_v31 = vadd.f32 %v566_v36, %v1520_v29 }
 0x267   :  { %1202 = vtanh.f32 %v568_v31 }
 0x274   :  { %v1203_v37 = vpop.eup %1202 }
 0x275   :  { %v570_v38 = vsub.f32 %v541_v1, %v1203_v37  ;;  %v1755_v1 = vpop.permute.xlu0 %685 }
 0x277   :  { %v572_v39 = vrot.slane %v570_v38, 2 }
 0x279   :  { %v574_v23 = vmul.f32 %v1201_v19, %v572_v39  ;;  %v1759_v13 = vpop.permute.xlu0 %695 }
 0x27b   :  { %v576_v29 = vrot.slane %v574_v23, 6 }
 0x27d   :  { %v578_v41 = vadd.f32 %v1203_v37, %v576_v29  ;;  %v1763_v48 = vpop.permute.xlu0 %705  ;;  %v1772_v37 = vpop.permute.xlu1 %984 }
 0x27f   :  { %v582_v42 = vrot.slane %v578_v41, %v1419_v52  ;;  %v587_v45 = vrot.slane %v578_v41, %v1530_v54 }
 0x281   :  { %v583_v30 = vmul.f32 %v582_v42, %v1510_v26  ;;  %v588_v7 = vmul.f32 %v587_v45, %v1508_v43  ;;  %v857_v12 = vpop.permute.xlu0 %856  ;;  %v1777_v23 = vpop.permute.xlu1 %994 }
 0x283   :  { %v589_v3 = vadd.f32 %v588_v7, %v583_v30 }
 0x285   :  { %v590_v4 = vadd.f32 %v589_v3, %v1522_v6  ;;  %v597_v55 = vadd.f32 %v589_v3, %v1526_v10  ;;  %v872_v57 = vpop.permute.xlu0 %871  ;;  %v1781_v10 = vpop.permute.xlu1 %999 }
 0x287   :  { %v1145_v2 = vmul.f32 -1.442695, %v590_v4  ;;  %v599_v61 = vrot.slane %v597_v55, 4 }
 0x289   :  { %1204 = vpow2.f32 %v1145_v2  ;;  %v1770_v36 = vpop.permute.xlu0 %979  ;;  %v1785_v7 = vpop.permute.xlu1 %1004 }
 0x28d   :  { %v1775_v39 = vpop.permute.xlu0 %989 }
 0x291   :  { %v1779_v29 = vpop.permute.xlu0 %881 }
 0x295   :  { %v1783_v45 = vpop.permute.xlu0 %886 }
 0x296   :  { %v1205_v26 = vpop.eup %1204 }
 0x297   :  { %v594_v43 = vadd.f32 1.0, %v1205_v26  ;;  %v1789_v26 = vpop.permute.xlu1 %1009 }
 0x299   :  { %1206 = vrcp.f32 %v594_v43  ;;  %v1787_v2 = vpop.permute.xlu0 %891 }
 0x2a6   :  { %v1207_v19 = vpop.eup %1206 }
 0x2a7   :  { %v601_v20 = vmul.f32 %v1207_v19, %v599_v61  ;;  %v1791_v61 = vpop.permute.xlu0 %896 }
 0x2a9   :  { %v603_v31 = vrot.slane %v601_v20, 4  ;;  %v1793_v20 = vpop.permute.xlu1 %1014 }
 0x2aa   :  { %1935 = vst [vmem:[#allocation7_spill] sm:$0xff] %v1793_v20 }
 0x2ab   :  { %v605_v38 = vadd.f32 %v603_v31, %v1522_v6 }
 0x2ad   :  { %1208 = vtanh.f32 %v605_v38  ;;  %v1801_v38 = vpop.permute.xlu0 %901 }
 0x2ba   :  { %v1209_v42 = vpop.eup %1208 }
 0x2bb   :  { %v607_v30 = vsub.f32 %v578_v41, %v1209_v42 }
 0x2bd   :  { %v609_v3 = vrot.slane %v607_v30, 2 }
 0x2bf   :  { %v611_v4 = vmul.f32 %v1207_v19, %v609_v3 }
 0x2c1   :  { %v613_v6 = vrot.slane %v611_v4, 6 }
 0x2c3   :  { %v615_v43 = vadd.f32 %v1209_v42, %v613_v6  ;;  %v1816_v6 = vpop.permute.xlu1 %1019 }
 0x2c4   :  { %1936 = vst [vmem:[#allocation8_spill] sm:$0xff] %v1816_v6  ;;  %v1836_v6 = vpop.permute.xlu0 %906 }
 0x2c5   :  { %v616_v55 = vmax.f32 %v615_v43, 0.0 }
 0x2c7   :  { %v1796_v31 = vrot.slane %v616_v55, %v1419_v52  ;;  %v1799_v41 = vrot.slane %v616_v55, %v1530_v54  ;;  %v1843_v20 = vpop.permute.xlu1 %1024 }
 0x2c9   :  { %v804_v19 = vmul.f32 %v1799_v41, %v1706_v51  ;;  %v718_v30 = vmul.f32 %v1796_v31, %v1736_v35  ;;  %v721_v42 = vmul.f32 %v1796_v31, %v656_v40  ;;  %v719_v3 = vmul.f32 %v1796_v31, %v1691_v9 }
 0x2ca   :  { %v720_v52 = vmul.f32 %v1796_v31, %v1695_v27  ;;  %v802_v54 = vmul.f32 %v1799_v41, %v1725_v21  ;;  %v803_v4 = vmul.f32 %v1799_v41, %v1730_v33  ;;  %v717_v51 = vmul.f32 %v1796_v31, %v1689_v8 }
 0x2cb   :  { %v723_v35 = vmul.f32 %v1796_v31, %v1742_v25  ;;  %v805_v9 = vmul.f32 %v1799_v41, %v1734_v44  ;;  %v807_v27 = vmul.f32 %v1799_v41, %v1738_v22  ;;  %v806_v21 = vmul.f32 %v1799_v41, %v1710_v56 }
 0x2cc   :  { %v818_v40 = vadd.f32 %v802_v54, %v718_v30  ;;  %v808_v33 = vmul.f32 %v1799_v41, %v1714_v59  ;;  %v722_v43 = vmul.f32 %v1796_v31, %v1700_v14  ;;  %v801_v25 = vmul.f32 %v1799_v41, %v1702_v49 }
 0x2cd   :  { %v821_v8 = vadd.f32 %v805_v9, %v721_v42  ;;  %v724_v44 = vmul.f32 %v1796_v31, %v1704_v50  ;;  %v819_v24 = vadd.f32 %v803_v4, %v719_v3  ;;  %v820_v22 = vadd.f32 %v804_v19, %v720_v52 }
 0x2ce   :  { %v930_v55 = vadd.f32 %v857_v12, %v818_v40  ;;  %v725_v56 = vmul.f32 %v1796_v31, %v1750_v5  ;;  %v809_v59 = vmul.f32 %v1799_v41, %v1740_v28  ;;  %v823_v30 = vadd.f32 %v807_v27, %v723_v35  ;;  %v1030_v40 = vpop.permute.xlu1 %1029 }
 0x2cf   :  { %v817_v14 = vadd.f32 %v801_v25, %v717_v51  ;;  %v933_v54 = vadd.f32 %v872_v57, %v821_v8  ;;  %v931_v49 = vadd.f32 %v1765_v11, %v819_v24  ;;  %v932_v9 = vadd.f32 %v867_v15, %v820_v22  ;;  %v912_v51 = vpop.permute.xlu0 %911 }
 0x2d0   :  { %v946_v42 = vmax.f32 %v930_v55, 0.0  ;;  %v810_v50 = vmul.f32 %v1799_v41, %v1719_v17  ;;  %v726_v5 = vmul.f32 %v1796_v31, %v1708_v53  ;;  %v727_v28 = vmul.f32 %v1796_v31, %v1755_v1 }
 0x2d1   :  { %v929_v12 = vadd.f32 %v1761_v63, %v817_v14  ;;  %v824_v19 = vadd.f32 %v808_v33, %v724_v44  ;;  %v947_v3 = vmax.f32 %v931_v49, 0.0  ;;  %v948_v52 = vmax.f32 %v932_v9, 0.0 }
 0x2d2   :  { %v822_v24 = vadd.f32 %v806_v21, %v722_v43  ;;  %v1058_v11 = vmul.f32 %v1772_v37, %v946_v42  ;;  %v949_v15 = vmax.f32 %v933_v54, 0.0  ;;  %v811_v17 = vmul.f32 %v1799_v41, %v1746_v46 }
 0x2d3   :  { %v945_v57 = vmax.f32 %v929_v12, 0.0  ;;  %v935_v63 = vadd.f32 %v1779_v29, %v823_v30  ;;  %v825_v4 = vadd.f32 %v809_v59, %v725_v56  ;;  %v1059_v35 = vmul.f32 %v1775_v39, %v947_v3  ;;  %v917_v56 = vpop.permute.xlu0 %916 }
 0x2d4   :  { %v934_v1 = vadd.f32 %v1768_v16, %v822_v24  ;;  %v1075_v27 = vsel %vm1073_vm0, %v1058_v11, 0.0  ;;  %v812_v21 = vmul.f32 %v1799_v41, %v1723_v62  ;;  %v728_v37 = vmul.f32 %v1796_v31, %v1712_v58 }
 0x2d5   :  { %v1057_v53 = vmul.f32 %v1770_v36, %v945_v57  ;;  %v936_v46 = vadd.f32 %v1783_v45, %v824_v19  ;;  %v826_v29 = vadd.f32 %v810_v50, %v726_v5  ;;  %v1060_v36 = vmul.f32 %v1777_v23, %v948_v52 }
 0x2d6   :  { %v950_v33 = vmax.f32 %v934_v1, 0.0  ;;  %v729_v16 = vmul.f32 %v1796_v31, %v1759_v13  ;;  %v813_v39 = vmul.f32 %v1799_v41, %v1753_v47  ;;  %v827_v8 = vadd.f32 %v811_v17, %v727_v28  ;;  %v1937_v28 = vld [vmem:[#allocation7_spill] sm:$0xff] }
 0x2d7   :  { %v1074_v43 = vsel %vm1073_vm0, %v1057_v53, 0.0  ;;  %v951_v25 = vmax.f32 %v935_v63, 0.0  ;;  %v1077_v58 = vsel %vm1073_vm0, %v1059_v35, 0.0  ;;  %v937_v45 = vadd.f32 %v1787_v2, %v825_v4  ;;  %v922_v52 = vpop.permute.xlu0 %921 }
 0x2d8   :  { %v1076_v62 = vadd.f32 %v1075_v27, %v1074_v43  ;;  %v1061_v44 = vmul.f32 %v1781_v10, %v949_v15  ;;  %v814_v55 = vmul.f32 %v1799_v41, %v1728_v32  ;;  %v730_v23 = vmul.f32 %v1796_v31, %v1716_v60  ;;  %v1035_v60 = vpop.permute.xlu1 %1034 }
 0x2d9   :  { %v828_v22 = vadd.f32 %v812_v21, %v728_v37  ;;  %v952_v59 = vmax.f32 %v936_v46, 0.0  ;;  %v938_v47 = vadd.f32 %v1791_v61, %v826_v29  ;;  %v1079_v30 = vsel %vm1073_vm0, %v1060_v36, 0.0 }
 0x2da   :  { %v1078_v13 = vadd.f32 %v1077_v58, %v1076_v62  ;;  %v1062_v14 = vmul.f32 %v1785_v7, %v950_v33  ;;  %v731_v2 = vmul.f32 %v1796_v31, %v1763_v48  ;;  %v815_v10 = vmul.f32 %v1799_v41, %v1757_v0 }
 0x2db   :  { %v939_v32 = vadd.f32 %v1801_v38, %v827_v8  ;;  %v953_v54 = vmax.f32 %v937_v45, 0.0  ;;  %v829_v49 = vadd.f32 %v813_v39, %v729_v16  ;;  %v1081_v9 = vsel %vm1073_vm0, %v1061_v44, 0.0  ;;  %v927_v21 = vpop.permute.xlu0 %926 }
 0x2dc   :  { %v1080_v42 = vadd.f32 %v1079_v30, %v1078_v13  ;;  %v1063_v61 = vmul.f32 %v1789_v26, %v951_v25  ;;  %v816_v50 = vmul.f32 %v1799_v41, %v1732_v34  ;;  %v732_v7 = vmul.f32 %v1796_v31, %v1721_v18  ;;  %v1938_v34 = vld [vmem:[#allocation8_spill] sm:$0xff]  ;;  %v1040_v31 = vpop.permute.xlu1 %1039 }
 0x2dd   :  { %v940_v48 = vadd.f32 %v1836_v6, %v828_v22  ;;  %v954_v0 = vmax.f32 %v938_v47, 0.0  ;;  %v830_v5 = vadd.f32 %v814_v55, %v730_v23  ;;  %v1083_v38 = vsel %vm1073_vm0, %v1062_v14, 0.0 }
 0x2de   :  { %v1082_v12 = vadd.f32 %v1081_v9, %v1080_v42  ;;  %v1064_v19 = vmul.f32 %v1937_v28, %v952_v59  ;;  %v955_v3 = vmax.f32 %v939_v32, 0.0  ;;  %v941_v24 = vadd.f32 %v912_v51, %v829_v49 }
 0x2df   :  { %v831_v26 = vadd.f32 %v815_v10, %v731_v2  ;;  %v1085_v11 = vsel %vm1073_vm0, %v1063_v61, 0.0  ;;  %v1065_v41 = vmul.f32 %v1938_v34, %v953_v54  ;;  %v956_v15 = vmax.f32 %v940_v48, 0.0  ;;  %v1050_v44 = vpop.permute.xlu0 %1049  ;;  %v1939_v61 = vld [vmem:[#allocation6_spill] sm:$0xff] }
 0x2e0   :  { %v1084_v57 = vadd.f32 %v1083_v38, %v1082_v12  ;;  %v942_v6 = vadd.f32 %v917_v56, %v830_v5  ;;  %v832_v17 = vadd.f32 %v816_v50, %v732_v7  ;;  %v1087_v63 = vsel %vm1073_vm0, %v1064_v19, 0.0  ;;  %v1045_v16 = vpop.permute.xlu1 %1044 }
 0x2e1   :  { %v1066_v4 = vmul.f32 %v1843_v20, %v954_v0  ;;  %v957_v35 = vmax.f32 %v941_v24, 0.0  ;;  %v943_v1 = vadd.f32 %v922_v52, %v831_v26  ;;  %v1089_v27 = vsel %vm1073_vm0, %v1065_v41, 0.0 }
 0x2e2   :  { %v1086_v18 = vadd.f32 %v1085_v11, %v1084_v57  ;;  %v1067_v51 = vmul.f32 %v1030_v40, %v955_v3  ;;  %v958_v46 = vmax.f32 %v942_v6, 0.0  ;;  %v944_v29 = vadd.f32 %v927_v21, %v832_v17 }
 0x2e3   :  { %v1091_v33 = vsel %vm1073_vm0, %v1066_v4, 0.0  ;;  %v1068_v43 = vmul.f32 %v1035_v60, %v956_v15  ;;  %v959_v39 = vmax.f32 %v943_v1, 0.0  ;;  %v1069_v62 = vmul.f32 %v1040_v31, %v957_v35  ;;  %v1115_v49 = vpop.permute.xlu0 %1114 }
 0x2e4   :  { %v1088_v53 = vadd.f32 %v1087_v63, %v1086_v18  ;;  %v1093_v8 = vsel %vm1073_vm0, %v1067_v51, 0.0  ;;  %v960_v25 = vmax.f32 %v944_v29, 0.0  ;;  %v1070_v45 = vmul.f32 %v1045_v16, %v958_v46  ;;  %v1055_v13 = vpop.permute.xlu1 %1054 }
 0x2e5   :  { %v1095_v58 = vsel %vm1073_vm0, %v1068_v43, 0.0  ;;  %v1071_v55 = vmul.f32 %v1050_v44, %v959_v39  ;;  %v1097_v23 = vsel %vm1073_vm0, %v1069_v62, 0.0  ;;  %v1120_v50 = vrot.slane %v1115_v49, %v1939_v61 }
 0x2e6   :  { %v1090_v37 = vadd.f32 %v1089_v27, %v1088_v53  ;;  %v1099_v56 = vsel %vm1073_vm0, %v1070_v45, 0.0  ;;  %v1072_v59 = vmul.f32 %v1055_v13, %v960_v25 }
 0x2e7   :  { %v1101_v30 = vsel %vm1073_vm0, %v1071_v55, 0.0 }
 0x2e8   :  { %v1092_v36 = vadd.f32 %v1091_v33, %v1090_v37  ;;  %v1103_v2 = vsel %vm1073_vm0, %v1072_v59, 0.0 }
 0x2ea   :  { %v1094_v20 = vadd.f32 %v1093_v8, %v1092_v36 }
 0x2ec   :  { %v1096_v40 = vadd.f32 %v1095_v58, %v1094_v20 }
 0x2ee   :  { %v1098_v22 = vadd.f32 %v1097_v23, %v1096_v40 }
 0x2f0   :  { %v1100_v47 = vadd.f32 %v1099_v56, %v1098_v22 }
 0x2f2   :  { %v1102_v14 = vadd.f32 %v1101_v30, %v1100_v47 }
 0x2f4   :  { %v1104_v10 = vadd.f32 %v1103_v2, %v1102_v14 }
 0x2f6   :  { %v1105_v32 = vrot.slane %v1104_v10, 4 }
 0x2f8   :  { %v1106_v42 = vadd.f32 %v1105_v32, %v1104_v10 }
 0x2fa   :  { %v1107_v60 = vrot.slane %v1106_v42, 2 }
 0x2fc   :  { %v1108_v54 = vadd.f32 %v1107_v60, %v1106_v42 }
 0x2fe   :  { %v1109_v9 = vrot.slane %v1108_v54, 1 }
 0x300   :  { %v1110_v7 = vadd.f32 %v1109_v9, %v1108_v54 }
 0x302   :  { %v1121_v48 = vadd.f32 %v1120_v50, %v1110_v7 }
 0x304   :  { %1123 = vst.msk [vmem:[#allocation3] sm:$0x1] %vm1122_vm1, %v1121_v48 }
 0x305   :  { %1221 = shalt.err (!%p1218_p4)
}
 0x306   :  { %1133 = dma.vmem_to_hbm [thread:$0]  %s1131_s17, 16, %s1920_s9, [#allocation4]  }
 0x307   :  { %1230 = dma.done.wait [#allocation4], 16  }
 0x308   :  { %1231 = vsyncadd [#allocation4], 4294967280 }
 0x309   :  { %1137 = vsyncpa [#allocation4], 1 }

</bundles_post_ra>
